<compile_context>
chip_gen: v6e
topology: v6e:2x2x1
jax: 0.10.0
libtpu: 0.0.40
codegen_flags: <defaults>
</compile_context>

<pallas_src>
import functools

import jax
import jax.numpy as jnp
from jax import lax
from jax.experimental import pallas as pl
from jax.experimental.pallas import tpu as pltpu

EPS = 1e-5


def _inverted_residual_kernel(x_ref, w1_ref, b1_ref, dw_ref, b2_ref,
                              w3_ref, b3_ref, o_ref, hp_ref,
                              *, stride, use_res):
    Hp, Wp, Cin = x_ref.shape           # spatially padded input (H+2, W+2, Cin)
    TH_in, _, Chid = hp_ref.shape       # padded-h window for this row tile
    TH, Wo, Cout = o_ref.shape          # output row tile
    H = Hp - 2
    W = Wp - 2

    t = pl.program_id(1)
    row0 = pl.multiple_of(t * TH * stride, TH * stride)   # start row (padded coords)

    # ---- 1x1 expand conv (bf16 MXU) + bias + ReLU6 over the halo'd window ----
    xt = x_ref[pl.ds(row0, TH_in)]                         # (TH_in, W+2, Cin) f32
    xf = xt.reshape(TH_in * Wp, Cin).astype(jnp.bfloat16)
    h = jnp.dot(xf, w1_ref[...], preferred_element_type=jnp.float32)
    h = jnp.clip(h + b1_ref[...], 0.0, 6.0)
    h = h.reshape(TH_in, Wp, Chid)

    # Positions that correspond to the depthwise conv's zero padding must be
    # exactly zero (conv-of-padded-x would give clip(bias) there) -> mask them.
    rr = row0 + lax.broadcasted_iota(jnp.int32, (TH_in, Wp, Chid), 0)
    cc = lax.broadcasted_iota(jnp.int32, (TH_in, Wp, Chid), 1)
    valid = (rr >= 1) & (rr <= H) & (cc >= 1) & (cc <= W)
    hp_ref[...] = jnp.where(valid, h, 0.0)                 # padded-h scratch (f32)

    # ---- 3x3 depthwise conv (BN scale folded into dw), f32 ----
    dw = dw_ref[...]                                       # (9, Chid)
    acc = jnp.zeros((TH, Wo, Chid), jnp.float32)
    if stride == 1:
        for ky in range(3):
            for kx in range(3):
                win = hp_ref[ky:ky + TH, kx:kx + Wo, :]
                acc = acc + win * dw[ky * 3 + kx].reshape(1, 1, Chid)
    else:
        # stride 2: de-interleave columns once; the row subsample is along the
        # cheap leading axis.  (Not exercised by the toy test below.)
        hp = hp_ref[...]
        h_even = hp[:, 0::2, :]
        h_odd = hp[:, 1::2, :]
        for ky in range(3):
            for kx in range(3):
                src = h_even if kx % 2 == 0 else h_odd
                c0 = kx // 2
                win = src[ky:ky + 2 * (TH - 1) + 1:2, c0:c0 + Wo, :]
                acc = acc + win * dw[ky * 3 + kx].reshape(1, 1, Chid)

    g = acc.reshape(TH * Wo, Chid)
    g = jnp.clip(g + b2_ref[...], 0.0, 6.0)

    # ---- 1x1 project conv (bf16 MXU) + bias ----
    y = jnp.dot(g.astype(jnp.bfloat16), w3_ref[...],
                preferred_element_type=jnp.float32)
    y = (y + b3_ref[...]).reshape(TH, Wo, Cout)

    if use_res:
        y = y + x_ref[pl.ds(row0 + 1, TH), pl.ds(1, Wo), :]

    o_ref[...] = y


def _fold_bn(gamma, beta, mean, var):
    scale = gamma / jnp.sqrt(var + EPS)
    bias = beta - mean * scale
    return scale, bias


def _pick_row_tile(ho, max_tile=8):
    """Largest divisor of `ho` that is <= max_tile (>=1)."""
    for th in range(min(ho, max_tile), 0, -1):
        if ho % th == 0:
            return th
    return 1


def inverted_residual_pallas(x_nchw, params, stride, *, max_row_tile=8):
    """x_nchw: (N, inp, H, W) float32. Returns (N, oup, Ho, Wo) float32."""
    assert stride in (1, 2)
    N, inp, H, W = x_nchw.shape
    chid = params["w1"].shape[0]
    oup = params["w3"].shape[0]
    use_res = (stride == 1) and (inp == oup)
    Ho = (H + 2 - 3) // stride + 1
    Wo = (W + 2 - 3) // stride + 1

    TH = _pick_row_tile(Ho, max_row_tile)
    n_tiles = Ho // TH
    TH_in = (TH - 1) * stride + 3          # input rows needed per tile (halo incl.)

    # ---- parameter plumbing: fold BN scales into the conv weights ----
    s1, b1 = _fold_bn(*params["bn1"])
    s2, b2 = _fold_bn(*params["bn2"])
    s3, b3 = _fold_bn(*params["bn3"])

    w1f = (params["w1"][:, :, 0, 0].T * s1[None, :]).astype(jnp.bfloat16)      # (inp, chid)
    dw9 = (params["dw"][:, 0].reshape(chid, 9).T * s2[None, :]).astype(jnp.float32)  # (9, chid)
    w3f = (params["w3"][:, :, 0, 0].T * s3[None, :]).astype(jnp.bfloat16)      # (chid, oup)
    b1 = b1.reshape(1, chid).astype(jnp.float32)
    b2 = b2.reshape(1, chid).astype(jnp.float32)
    b3 = b3.reshape(1, oup).astype(jnp.float32)

    # NHWC + spatial zero-pad (1 on each side) so every row-tile's input window
    # is a fixed-size, in-bounds slice; pad positions are masked in-kernel.
    x_nhwc = jnp.transpose(x_nchw, (0, 2, 3, 1)).astype(jnp.float32)
    xp = jnp.pad(x_nhwc, ((0, 0), (1, 1), (1, 1), (0, 0)))

    kernel = functools.partial(_inverted_residual_kernel,
                               stride=stride, use_res=use_res)

    out_nhwc = pl.pallas_call(
        kernel,
        out_shape=jax.ShapeDtypeStruct((N, Ho, Wo, oup), jnp.float32),
        grid_spec=pltpu.PrefetchScalarGridSpec(
            num_scalar_prefetch=0,
            grid=(N, n_tiles),
            in_specs=[
                # Whole padded image per batch element stays blocked in VMEM;
                # the kernel slices its halo'd row window with pl.ds.
                pl.BlockSpec((pl.Squeezed(), H + 2, W + 2, inp),
                             lambda n, t: (n, 0, 0, 0)),
                pl.BlockSpec((inp, chid), lambda n, t: (0, 0)),   # w1 (bf16)
                pl.BlockSpec((1, chid), lambda n, t: (0, 0)),     # b1
                pl.BlockSpec((9, chid), lambda n, t: (0, 0)),     # dw (scale folded)
                pl.BlockSpec((1, chid), lambda n, t: (0, 0)),     # b2
                pl.BlockSpec((chid, oup), lambda n, t: (0, 0)),   # w3 (bf16)
                pl.BlockSpec((1, oup), lambda n, t: (0, 0)),      # b3
            ],
            out_specs=pl.BlockSpec((pl.Squeezed(), TH, Wo, oup),
                                   lambda n, t: (n, t, 0, 0)),
            scratch_shapes=[pltpu.VMEM((TH_in, W + 2, chid), jnp.float32)],
        ),
        compiler_params=pltpu.CompilerParams(
            dimension_semantics=("parallel", "parallel"),
            vmem_limit_bytes=32 * 1024 * 1024),
    )(xp, w1f, b1, dw9, b2, w3f, b3)

    return jnp.transpose(out_nhwc, (0, 3, 1, 2))


def inverted_residual_ref(x, params, stride):
    """Pure-JAX reference in NCHW (mirrors the PyTorch module, eval-mode BN)."""
    def bn(h, g, b, m, v):
        sh = (1, -1, 1, 1)
        return (h - m.reshape(sh)) / jnp.sqrt(v.reshape(sh) + EPS) * \
            g.reshape(sh) + b.reshape(sh)

    dn = ("NCHW", "OIHW", "NCHW")
    h = lax.conv_general_dilated(x, params["w1"], (1, 1), "VALID",
                                 dimension_numbers=dn)
    h = jnp.clip(bn(h, *params["bn1"]), 0.0, 6.0)
    chid = params["dw"].shape[0]
    h = lax.conv_general_dilated(h, params["dw"], (stride, stride),
                                 ((1, 1), (1, 1)), dimension_numbers=dn,
                                 feature_group_count=chid)
    h = jnp.clip(bn(h, *params["bn2"]), 0.0, 6.0)
    y = lax.conv_general_dilated(h, params["w3"], (1, 1), "VALID",
                                 dimension_numbers=dn)
    y = bn(y, *params["bn3"])
    if stride == 1 and x.shape[1] == y.shape[1]:
        y = y + x
    return y


def make_params(key, inp, oup, expand_ratio):
    chid = inp * expand_ratio
    ks = jax.random.split(key, 6)

    def bn_params(k, c):
        k1, k2, k3, k4 = jax.random.split(k, 4)
        gamma = 1.0 + 0.1 * jax.random.normal(k1, (c,), jnp.float32)
        beta = 0.1 * jax.random.normal(k2, (c,), jnp.float32)
        mean = 0.1 * jax.random.normal(k3, (c,), jnp.float32)
        var = 1.0 + 0.1 * jax.random.uniform(k4, (c,), jnp.float32)
        return (gamma, beta, mean, var)

    return {
        "w1": 0.2 * jax.random.normal(ks[0], (chid, inp, 1, 1), jnp.float32),
        "bn1": bn_params(ks[1], chid),
        "dw": 0.2 * jax.random.normal(ks[2], (chid, 1, 3, 3), jnp.float32),
        "bn2": bn_params(ks[3], chid),
        "w3": 0.2 * jax.random.normal(ks[4], (oup, chid, 1, 1), jnp.float32),
        "bn3": bn_params(ks[5], oup),
    }


if __name__ == "__main__":
    # N=2, inp=oup=4, H=W=16, stride=1, expand_ratio=6 (hidden=24):
    # residual path is exercised; Ho=16 -> TH=8 -> grid=(2, 2).
    N, INP, OUP, H, W = 2, 4, 4, 16, 16
    STRIDE, EXPAND = 1, 6

    key = jax.random.PRNGKey(0)
    kx, kp = jax.random.split(key)
    x = jax.random.normal(kx, (N, INP, H, W), jnp.float32)
    params = make_params(kp, INP, OUP, EXPAND)

    out = inverted_residual_pallas(x, params, STRIDE)
    out = jax.block_until_ready(out)

    ref = jax.block_until_ready(inverted_residual_ref(x, params, STRIDE))
    assert out.shape == ref.shape, (out.shape, ref.shape)
    assert jnp.allclose(out, ref, atol=2e-2, rtol=2e-2), \
        float(jnp.max(jnp.abs(out - ref)))

    print("KERNEL_OK")
</pallas_src>

<mosaic_0001>
module attributes {stable_mosaic.version = 11 : i64} {
  func.func @_inverted_residual_kernel(%arg0: i32, %arg1: i32, %arg2: memref<1x18x18x4xf32, #tpu.memory_space<vmem>>, %arg3: memref<4x24xbf16, #tpu.memory_space<vmem>>, %arg4: memref<1x24xf32, #tpu.memory_space<vmem>>, %arg5: memref<9x24xf32, #tpu.memory_space<vmem>>, %arg6: memref<1x24xf32, #tpu.memory_space<vmem>>, %arg7: memref<24x4xbf16, #tpu.memory_space<vmem>>, %arg8: memref<1x4xf32, #tpu.memory_space<vmem>>, %arg9: memref<1x8x16x4xf32, #tpu.memory_space<vmem>>, %arg10: memref<10x18x24xf32, #tpu.memory_space<vmem>>) attributes {dimension_semantics = [#tpu.dimension_semantics<parallel>, #tpu.dimension_semantics<parallel>], iteration_bounds = array<i64: 2, 2>, scalar_prefetch = 0 : i64, scratch_operands = 1 : i64, tpu.core_type = #tpu.core_type<tc>, window_params = [{transform_indices = @transform_0, window_bounds = array<i64: 1, 18, 18, 4>}, {pipeline_mode = #tpu.pipeline_mode<synchronous>, transform_indices = @transform_1, window_bounds = array<i64: 4, 24>}, {pipeline_mode = #tpu.pipeline_mode<synchronous>, transform_indices = @transform_2, window_bounds = array<i64: 1, 24>}, {pipeline_mode = #tpu.pipeline_mode<synchronous>, transform_indices = @transform_3, window_bounds = array<i64: 9, 24>}, {pipeline_mode = #tpu.pipeline_mode<synchronous>, transform_indices = @transform_4, window_bounds = array<i64: 1, 24>}, {pipeline_mode = #tpu.pipeline_mode<synchronous>, transform_indices = @transform_5, window_bounds = array<i64: 24, 4>}, {pipeline_mode = #tpu.pipeline_mode<synchronous>, transform_indices = @transform_6, window_bounds = array<i64: 1, 4>}, {transform_indices = @transform_7, window_bounds = array<i64: 1, 8, 16, 4>}]} {
    %c8_i32 = arith.constant 8 : i32
    %0 = arith.muli %arg1, %c8_i32 : i32
    %c1_i32 = arith.constant 1 : i32
    %1 = arith.muli %0, %c1_i32 : i32
    %2 = tpu.assume_multiple %1, 8 : i32
    %c0 = arith.constant 0 : index
    %3 = arith.index_cast %2 : i32 to index
    %c0_0 = arith.constant 0 : index
    %c0_1 = arith.constant 0 : index
    %4 = vector.load %arg2[%c0, %3, %c0_0, %c0_1] : memref<1x18x18x4xf32, #tpu.memory_space<vmem>>, vector<1x10x18x4xf32>
    %5 = vector.shape_cast %4 : vector<1x10x18x4xf32> to vector<10x18x4xf32>
    %6 = vector.shape_cast %5 : vector<10x18x4xf32> to vector<180x4xf32>
    %7 = arith.truncf %6 : vector<180x4xf32> to vector<180x4xbf16>
    %c0_2 = arith.constant 0 : index
    %c0_3 = arith.constant 0 : index
    %8 = vector.load %arg3[%c0_2, %c0_3] : memref<4x24xbf16, #tpu.memory_space<vmem>>, vector<4x24xbf16>
    %cst = arith.constant dense<0.000000e+00> : vector<180x24xf32>
    %9 = tpu.matmul %7, %8, %cst {dimension_numbers = #tpu.dot_dimension_numbers<[1], [0], [0], [1], [0, 0, 1, 1], [], []>} : vector<180x4xbf16>, vector<4x24xbf16>, vector<180x24xf32> -> vector<180x24xf32>
    %c0_4 = arith.constant 0 : index
    %c0_5 = arith.constant 0 : index
    %10 = vector.load %arg4[%c0_4, %c0_5] : memref<1x24xf32, #tpu.memory_space<vmem>>, vector<1x24xf32>
    %11 = vector.broadcast %10 : vector<1x24xf32> to vector<180x24xf32>
    %12 = arith.addf %9, %11 : vector<180x24xf32>
    %cst_6 = arith.constant 0.000000e+00 : f32
    %cst_7 = arith.constant 6.000000e+00 : f32
    %13 = vector.broadcast %cst_6 : f32 to vector<180x24xf32>
    %14 = arith.maximumf %13, %12 : vector<180x24xf32>
    %15 = vector.broadcast %cst_7 : f32 to vector<180x24xf32>
    %16 = arith.minimumf %15, %14 : vector<180x24xf32>
    %17 = vector.shape_cast %16 : vector<180x24xf32> to vector<10x18x24xf32>
    %18 = tpu.iota {dimensions = array<i32: 0>} : vector<10x18x24xi32>
    %19 = vector.broadcast %2 : i32 to vector<10x18x24xi32>
    %20 = arith.addi %19, %18 : vector<10x18x24xi32>
    %21 = tpu.iota {dimensions = array<i32: 1>} : vector<10x18x24xi32>
    %c1_i32_8 = arith.constant 1 : i32
    %22 = vector.broadcast %c1_i32_8 : i32 to vector<10x18x24xi32>
    %23 = arith.cmpi sge, %20, %22 : vector<10x18x24xi32>
    %c16_i32 = arith.constant 16 : i32
    %24 = vector.broadcast %c16_i32 : i32 to vector<10x18x24xi32>
    %25 = arith.cmpi sle, %20, %24 : vector<10x18x24xi32>
    %26 = arith.andi %23, %25 : vector<10x18x24xi1>
    %c1_i32_9 = arith.constant 1 : i32
    %27 = vector.broadcast %c1_i32_9 : i32 to vector<10x18x24xi32>
    %28 = arith.cmpi sge, %21, %27 : vector<10x18x24xi32>
    %29 = arith.andi %26, %28 : vector<10x18x24xi1>
    %c16_i32_10 = arith.constant 16 : i32
    %30 = vector.broadcast %c16_i32_10 : i32 to vector<10x18x24xi32>
    %31 = arith.cmpi sle, %21, %30 : vector<10x18x24xi32>
    %32 = arith.andi %29, %31 : vector<10x18x24xi1>
    %cst_11 = arith.constant 0.000000e+00 : f32
    %33 = vector.broadcast %cst_11 : f32 to vector<10x18x24xf32>
    %34 = arith.select %32, %17, %33 : vector<10x18x24xi1>, vector<10x18x24xf32>
    %c0_12 = arith.constant 0 : index
    %c0_13 = arith.constant 0 : index
    %c0_14 = arith.constant 0 : index
    %35 = vector.load %arg10[%c0_12, %c0_13, %c0_14] : memref<10x18x24xf32, #tpu.memory_space<vmem>>, vector<10x18x24xf32>
    tpu.vector_store %arg10[%c0_12, %c0_13, %c0_14], %34 {strides = array<i32>} : memref<10x18x24xf32, #tpu.memory_space<vmem>>, vector<10x18x24xf32>,
    %c0_15 = arith.constant 0 : index
    %c0_16 = arith.constant 0 : index
    %36 = vector.load %arg5[%c0_15, %c0_16] : memref<9x24xf32, #tpu.memory_space<vmem>>, vector<9x24xf32>
    %cst_17 = arith.constant 0.000000e+00 : f32
    %37 = vector.broadcast %cst_17 : f32 to vector<8x16x24xf32>
    %c0_18 = arith.constant 0 : index
    %c0_19 = arith.constant 0 : index
    %c0_20 = arith.constant 0 : index
    %38 = vector.load %arg10[%c0_18, %c0_19, %c0_20] : memref<10x18x24xf32, #tpu.memory_space<vmem>>, vector<8x16x24xf32>
    %39 = vector.extract_strided_slice %36 {offsets = [0, 0], sizes = [1, 24], strides = [1, 1]} : vector<9x24xf32> to vector<1x24xf32>
    %40 = vector.shape_cast %39 : vector<1x24xf32> to vector<24xf32>
    %41 = vector.shape_cast %40 : vector<24xf32> to vector<1x1x24xf32>
    %42 = vector.broadcast %41 : vector<1x1x24xf32> to vector<8x16x24xf32>
    %43 = arith.mulf %38, %42 : vector<8x16x24xf32>
    %44 = arith.addf %37, %43 : vector<8x16x24xf32>
    %c0_21 = arith.constant 0 : index
    %c1 = arith.constant 1 : index
    %c0_22 = arith.constant 0 : index
    %45 = vector.load %arg10[%c0_21, %c1, %c0_22] : memref<10x18x24xf32, #tpu.memory_space<vmem>>, vector<8x16x24xf32>
    %46 = vector.extract_strided_slice %36 {offsets = [1, 0], sizes = [1, 24], strides = [1, 1]} : vector<9x24xf32> to vector<1x24xf32>
    %47 = vector.shape_cast %46 : vector<1x24xf32> to vector<24xf32>
    %48 = vector.shape_cast %47 : vector<24xf32> to vector<1x1x24xf32>
    %49 = vector.broadcast %48 : vector<1x1x24xf32> to vector<8x16x24xf32>
    %50 = arith.mulf %45, %49 : vector<8x16x24xf32>
    %51 = arith.addf %44, %50 : vector<8x16x24xf32>
    %c0_23 = arith.constant 0 : index
    %c2 = arith.constant 2 : index
    %c0_24 = arith.constant 0 : index
    %52 = vector.load %arg10[%c0_23, %c2, %c0_24] : memref<10x18x24xf32, #tpu.memory_space<vmem>>, vector<8x16x24xf32>
    %53 = vector.extract_strided_slice %36 {offsets = [2, 0], sizes = [1, 24], strides = [1, 1]} : vector<9x24xf32> to vector<1x24xf32>
    %54 = vector.shape_cast %53 : vector<1x24xf32> to vector<24xf32>
    %55 = vector.shape_cast %54 : vector<24xf32> to vector<1x1x24xf32>
    %56 = vector.broadcast %55 : vector<1x1x24xf32> to vector<8x16x24xf32>
    %57 = arith.mulf %52, %56 : vector<8x16x24xf32>
    %58 = arith.addf %51, %57 : vector<8x16x24xf32>
    %c1_25 = arith.constant 1 : index
    %c0_26 = arith.constant 0 : index
    %c0_27 = arith.constant 0 : index
    %59 = vector.load %arg10[%c1_25, %c0_26, %c0_27] : memref<10x18x24xf32, #tpu.memory_space<vmem>>, vector<8x16x24xf32>
    %60 = vector.extract_strided_slice %36 {offsets = [3, 0], sizes = [1, 24], strides = [1, 1]} : vector<9x24xf32> to vector<1x24xf32>
    %61 = vector.shape_cast %60 : vector<1x24xf32> to vector<24xf32>
    %62 = vector.shape_cast %61 : vector<24xf32> to vector<1x1x24xf32>
    %63 = vector.broadcast %62 : vector<1x1x24xf32> to vector<8x16x24xf32>
    %64 = arith.mulf %59, %63 : vector<8x16x24xf32>
    %65 = arith.addf %58, %64 : vector<8x16x24xf32>
    %c1_28 = arith.constant 1 : index
    %c1_29 = arith.constant 1 : index
    %c0_30 = arith.constant 0 : index
    %66 = vector.load %arg10[%c1_28, %c1_29, %c0_30] : memref<10x18x24xf32, #tpu.memory_space<vmem>>, vector<8x16x24xf32>
    %67 = vector.extract_strided_slice %36 {offsets = [4, 0], sizes = [1, 24], strides = [1, 1]} : vector<9x24xf32> to vector<1x24xf32>
    %68 = vector.shape_cast %67 : vector<1x24xf32> to vector<24xf32>
    %69 = vector.shape_cast %68 : vector<24xf32> to vector<1x1x24xf32>
    %70 = vector.broadcast %69 : vector<1x1x24xf32> to vector<8x16x24xf32>
    %71 = arith.mulf %66, %70 : vector<8x16x24xf32>
    %72 = arith.addf %65, %71 : vector<8x16x24xf32>
    %c1_31 = arith.constant 1 : index
    %c2_32 = arith.constant 2 : index
    %c0_33 = arith.constant 0 : index
    %73 = vector.load %arg10[%c1_31, %c2_32, %c0_33] : memref<10x18x24xf32, #tpu.memory_space<vmem>>, vector<8x16x24xf32>
    %74 = vector.extract_strided_slice %36 {offsets = [5, 0], sizes = [1, 24], strides = [1, 1]} : vector<9x24xf32> to vector<1x24xf32>
    %75 = vector.shape_cast %74 : vector<1x24xf32> to vector<24xf32>
    %76 = vector.shape_cast %75 : vector<24xf32> to vector<1x1x24xf32>
    %77 = vector.broadcast %76 : vector<1x1x24xf32> to vector<8x16x24xf32>
    %78 = arith.mulf %73, %77 : vector<8x16x24xf32>
    %79 = arith.addf %72, %78 : vector<8x16x24xf32>
    %c2_34 = arith.constant 2 : index
    %c0_35 = arith.constant 0 : index
    %c0_36 = arith.constant 0 : index
    %80 = vector.load %arg10[%c2_34, %c0_35, %c0_36] : memref<10x18x24xf32, #tpu.memory_space<vmem>>, vector<8x16x24xf32>
    %81 = vector.extract_strided_slice %36 {offsets = [6, 0], sizes = [1, 24], strides = [1, 1]} : vector<9x24xf32> to vector<1x24xf32>
    %82 = vector.shape_cast %81 : vector<1x24xf32> to vector<24xf32>
    %83 = vector.shape_cast %82 : vector<24xf32> to vector<1x1x24xf32>
    %84 = vector.broadcast %83 : vector<1x1x24xf32> to vector<8x16x24xf32>
    %85 = arith.mulf %80, %84 : vector<8x16x24xf32>
    %86 = arith.addf %79, %85 : vector<8x16x24xf32>
    %c2_37 = arith.constant 2 : index
    %c1_38 = arith.constant 1 : index
    %c0_39 = arith.constant 0 : index
    %87 = vector.load %arg10[%c2_37, %c1_38, %c0_39] : memref<10x18x24xf32, #tpu.memory_space<vmem>>, vector<8x16x24xf32>
    %88 = vector.extract_strided_slice %36 {offsets = [7, 0], sizes = [1, 24], strides = [1, 1]} : vector<9x24xf32> to vector<1x24xf32>
    %89 = vector.shape_cast %88 : vector<1x24xf32> to vector<24xf32>
    %90 = vector.shape_cast %89 : vector<24xf32> to vector<1x1x24xf32>
    %91 = vector.broadcast %90 : vector<1x1x24xf32> to vector<8x16x24xf32>
    %92 = arith.mulf %87, %91 : vector<8x16x24xf32>
    %93 = arith.addf %86, %92 : vector<8x16x24xf32>
    %c2_40 = arith.constant 2 : index
    %c2_41 = arith.constant 2 : index
    %c0_42 = arith.constant 0 : index
    %94 = vector.load %arg10[%c2_40, %c2_41, %c0_42] : memref<10x18x24xf32, #tpu.memory_space<vmem>>, vector<8x16x24xf32>
    %95 = vector.extract_strided_slice %36 {offsets = [8, 0], sizes = [1, 24], strides = [1, 1]} : vector<9x24xf32> to vector<1x24xf32>
    %96 = vector.shape_cast %95 : vector<1x24xf32> to vector<24xf32>
    %97 = vector.shape_cast %96 : vector<24xf32> to vector<1x1x24xf32>
    %98 = vector.broadcast %97 : vector<1x1x24xf32> to vector<8x16x24xf32>
    %99 = arith.mulf %94, %98 : vector<8x16x24xf32>
    %100 = arith.addf %93, %99 : vector<8x16x24xf32>
    %101 = vector.shape_cast %100 : vector<8x16x24xf32> to vector<128x24xf32>
    %c0_43 = arith.constant 0 : index
    %c0_44 = arith.constant 0 : index
    %102 = vector.load %arg6[%c0_43, %c0_44] : memref<1x24xf32, #tpu.memory_space<vmem>>, vector<1x24xf32>
    %103 = vector.broadcast %102 : vector<1x24xf32> to vector<128x24xf32>
    %104 = arith.addf %101, %103 : vector<128x24xf32>
    %cst_45 = arith.constant 0.000000e+00 : f32
    %cst_46 = arith.constant 6.000000e+00 : f32
    %105 = vector.broadcast %cst_45 : f32 to vector<128x24xf32>
    %106 = arith.maximumf %105, %104 : vector<128x24xf32>
    %107 = vector.broadcast %cst_46 : f32 to vector<128x24xf32>
    %108 = arith.minimumf %107, %106 : vector<128x24xf32>
    %109 = arith.truncf %108 : vector<128x24xf32> to vector<128x24xbf16>
    %c0_47 = arith.constant 0 : index
    %c0_48 = arith.constant 0 : index
    %110 = vector.load %arg7[%c0_47, %c0_48] : memref<24x4xbf16, #tpu.memory_space<vmem>>, vector<24x4xbf16>
    %cst_49 = arith.constant dense<0.000000e+00> : vector<128x4xf32>
    %111 = tpu.matmul %109, %110, %cst_49 {dimension_numbers = #tpu.dot_dimension_numbers<[1], [0], [0], [1], [0, 0, 1, 1], [], []>} : vector<128x24xbf16>, vector<24x4xbf16>, vector<128x4xf32> -> vector<128x4xf32>
    %c0_50 = arith.constant 0 : index
    %c0_51 = arith.constant 0 : index
    %112 = vector.load %arg8[%c0_50, %c0_51] : memref<1x4xf32, #tpu.memory_space<vmem>>, vector<1x4xf32>
    %113 = vector.broadcast %112 : vector<1x4xf32> to vector<128x4xf32>
    %114 = arith.addf %111, %113 : vector<128x4xf32>
    %115 = vector.shape_cast %114 : vector<128x4xf32> to vector<8x16x4xf32>
    %c1_i32_52 = arith.constant 1 : i32
    %116 = arith.addi %2, %c1_i32_52 : i32
    %c0_53 = arith.constant 0 : index
    %117 = arith.index_cast %116 : i32 to index
    %c1_54 = arith.constant 1 : index
    %c0_55 = arith.constant 0 : index
    %118 = vector.load %arg2[%c0_53, %117, %c1_54, %c0_55] : memref<1x18x18x4xf32, #tpu.memory_space<vmem>>, vector<1x8x16x4xf32>
    %119 = vector.shape_cast %118 : vector<1x8x16x4xf32> to vector<8x16x4xf32>
    %120 = arith.addf %115, %119 : vector<8x16x4xf32>
    %c0_56 = arith.constant 0 : index
    %c0_57 = arith.constant 0 : index
    %c0_58 = arith.constant 0 : index
    %c0_59 = arith.constant 0 : index
    %121 = vector.load %arg9[%c0_56, %c0_57, %c0_58, %c0_59] : memref<1x8x16x4xf32, #tpu.memory_space<vmem>>, vector<1x8x16x4xf32>
    %122 = vector.shape_cast %121 : vector<1x8x16x4xf32> to vector<8x16x4xf32>
    %123 = vector.shape_cast %120 : vector<8x16x4xf32> to vector<1x8x16x4xf32>
    tpu.vector_store %arg9[%c0_56, %c0_57, %c0_58, %c0_59], %123 {strides = array<i32>} : memref<1x8x16x4xf32, #tpu.memory_space<vmem>>, vector<1x8x16x4xf32>,
    return
  }
  func.func @transform_0(%arg0: i32, %arg1: i32) -> (i32, i32, i32, i32) {
    %c0_i32 = arith.constant 0 : i32
    %c0_i32_0 = arith.constant 0 : i32
    %c0_i32_1 = arith.constant 0 : i32
    %c0_i32_2 = arith.constant 0 : i32
    return %arg0, %c0_i32, %c0_i32_0, %c0_i32_1 : i32, i32, i32, i32
  }
  func.func @transform_1(%arg0: i32, %arg1: i32) -> (i32, i32) {
    %c0_i32 = arith.constant 0 : i32
    %c0_i32_0 = arith.constant 0 : i32
    %c0_i32_1 = arith.constant 0 : i32
    return %c0_i32, %c0_i32_0 : i32, i32
  }
  func.func @transform_2(%arg0: i32, %arg1: i32) -> (i32, i32) {
    %c0_i32 = arith.constant 0 : i32
    %c0_i32_0 = arith.constant 0 : i32
    %c0_i32_1 = arith.constant 0 : i32
    return %c0_i32, %c0_i32_0 : i32, i32
  }
  func.func @transform_3(%arg0: i32, %arg1: i32) -> (i32, i32) {
    %c0_i32 = arith.constant 0 : i32
    %c0_i32_0 = arith.constant 0 : i32
    %c0_i32_1 = arith.constant 0 : i32
    return %c0_i32, %c0_i32_0 : i32, i32
  }
  func.func @transform_4(%arg0: i32, %arg1: i32) -> (i32, i32) {
    %c0_i32 = arith.constant 0 : i32
    %c0_i32_0 = arith.constant 0 : i32
    %c0_i32_1 = arith.constant 0 : i32
    return %c0_i32, %c0_i32_0 : i32, i32
  }
  func.func @transform_5(%arg0: i32, %arg1: i32) -> (i32, i32) {
    %c0_i32 = arith.constant 0 : i32
    %c0_i32_0 = arith.constant 0 : i32
    %c0_i32_1 = arith.constant 0 : i32
    return %c0_i32, %c0_i32_0 : i32, i32
  }
  func.func @transform_6(%arg0: i32, %arg1: i32) -> (i32, i32) {
    %c0_i32 = arith.constant 0 : i32
    %c0_i32_0 = arith.constant 0 : i32
    %c0_i32_1 = arith.constant 0 : i32
    return %c0_i32, %c0_i32_0 : i32, i32
  }
  func.func @transform_7(%arg0: i32, %arg1: i32) -> (i32, i32, i32, i32) {
    %c0_i32 = arith.constant 0 : i32
    %c0_i32_0 = arith.constant 0 : i32
    %c0_i32_1 = arith.constant 0 : i32
    return %arg0, %arg1, %c0_i32, %c0_i32_0 : i32, i32, i32, i32
  }
}

</mosaic_0001>

<bundles_post_ra>
// kernel: tpu_custom_call.1
= control target key start
LH: loop header
LB: loop body
LE: loop exit
PB: predicated region body
PF: predicated region fallthrough
CT: control target
= control target key end

     0   :  { %s3548_s24 = smov 0   ;;  %s3550_s25 = smov 0   ;;  %s4737_s0 = inlined_call_operand.vmem [shape: f32[2,18,18,4], index: 0, kind: input, shape index: {}]   ;;  %s4738_s1 = inlined_call_operand.vmem [shape: bf16[4,24], index: 1, kind: input, shape index: {}]   ;;  %s4739_s2 = inlined_call_operand.vmem [shape: f32[1,24], index: 2, kind: input, shape index: {}]   ;;  %s4740_s3 = inlined_call_operand.vmem [shape: f32[9,24], index: 3, kind: input, shape index: {}]   ;;  %s4741_s4 = inlined_call_operand.vmem [shape: f32[1,24], index: 4, kind: input, shape index: {}]   ;;  %s4742_s5 = inlined_call_operand.vmem [shape: bf16[24,4], index: 5, kind: input, shape index: {}]   ;;  %s4743_s6 = inlined_call_operand.vmem [shape: f32[1,4], index: 6, kind: input, shape index: {}]   ;;  %s4744_s7 = inlined_call_operand.vmem [shape: f32[2,16,16,4], index: 7, kind: output, shape index: {}]  }
   0x1   :  { %s3552_s26 = smov 0   ;;  %s3554_s27 = smov 0  }
   0x2   :  { %s3556_s28 = smov 0  }
   0x3 LB: > { %s26_s29 = sadd.s32 1, %s3497_s26  ;;  %s29_s30 = sadd.s32 1, %s3501_s27  ;;  %s3505_s28 = sphi %s3556_s28, %s17_s28   ;;  %s3501_s27 = sphi %s3554_s27, %s4802_s27   ;;  %s3497_s26 = sphi %s3552_s26, %s4801_s26   ;;  %s3493_s25 = sphi %s3550_s25, %s4800_s25   ;;  %s3489_s24 = sphi %s3548_s24, %s4799_s24  }
   0x4   : > { %p27_p0 = scmp.ge.s32.totalorder %s26_s29, 2  ;;  %p3265_p1 = scmp.ge.s32.totalorder %s3505_s28, 1 }
   0x5   : > { %p251_p2 = scmp.lt.s32.totalorder %s3505_s28, 5 }
   0x6   : > { %s4804_s29 = smov (%p27_p0, %s26_s29), 0  ;;  %s4806_s30 = smov (!%p27_p0, %s29_s30), %s3501_s27 }
   0x7   : > { %p252_p3 = pnand %p3265_p1, %p251_p2  ;;  %p31_p4 = scmp.ge.s32.totalorder %s4806_s30, 2 }
   0x8   : > { %p288_p5 = scmp.lt.s32.totalorder (!%p252_p3), %s3493_s25, 1  ;;  %s3272_s10 = smul.u32 (!%p252_p3), 192, %s3489_s24 }
   0x9   : > { %s4808_s30 = smov (%p31_p4, %s4806_s30), 0  ;;  %255 = sbr.rel (%p252_p3) target bundleno = 614 (0x266), region = 48 }
   0xa   : > { %s3731_s20 = sshll.u32 (!%p252_p3), %s3489_s24, 3 }
   0xb   : > { %p296_p6 = scmp.lt.s32.totalorder (!%p252_p3), %s3731_s20, 15 }
   0xe   : > { %v1195_v0 = vld [vmem:[%s4738_s1] sm:$0x3]  ;;  %vm1240_vm0 = vcmask 1041408   ;;  %v372_v1 = vlaneseq  ;;  %s4810_s25 = smov (!%p288_p5, %s3493_s25), 1  ;;  %v3507_v3 = vmov 1983009808  }
   0xf   : > { %3400 = vmatprep.subr.msk.bf16.mxu0 %vm1240_vm0, %v1195_v0  ;;  %v1242_v2 = vsel %vm1240_vm0, %v1195_v0, 0  ;;  %3401 = vmatprep.subr.msk.bf16.mxu1 %vm1240_vm0, %v1195_v0  ;;  %v370_v4 = vunpack.c.l.s4 %v3507_v3  ;;  %s3403_s11 = smul.u32 432, %s4810_s25  ;;  %vm1203_vm1 = vcmask 31744   ;;  %vm3013_vm2 = vcmask 1043456   ;;  %s3269_s13 = sshll.u32 %s4810_s25, 5 }
  0x10   : > { %3353 = vmatpush3.bf16.msra.mxu0 %v1242_v2  ;;  %v3585_v5 = vshrl.u32 %v372_v1, 7  ;;  %3399 = vmatpush3.bf16.msra.mxu1 %v1242_v2  ;;  %vm2406_vm6 = vcmask 189440   ;;  %vm2403_vm14 = vcmask 195584  }
  0x11   : > { %v371_v6 = vunpack.c.0.s8 %v370_v4  ;;  %s292_s14 = scalar_lea.vmem %s4737_s0, %s3403_s11 }
  0x12   : > { %s3595_s15 = scalar_lea.vmem %s292_s14, %s3272_s10  ;;  %vm1867_vm10 = vcmp.ge.s32.totalorder %v3585_v5, 1 }
  0x13   : > { %v3593_v7 = vsub.s32 %v371_v6, %v3585_v5  ;;  %v308_v8 = vld [vmem:[%s3595_s15] sm:$0xff]  ;;  %v309_v9 = vld [vmem:[%s3595_s15 + $0x8] sm:$0xff]  ;;  %v311_v14 = vld [vmem:[%s3595_s15 + $0x18] sm:$0xff] }
  0x14   : > { %v368_v10 = vcombine.high %v308_v8, %v308_v8  ;;  %v385_v12 = vcombine.high %v309_v9, %v309_v9  ;;  %v312_v15 = vld [vmem:[%s3595_s15 + $0x20] sm:$0xff]  ;;  %v409_v16 = vcombine.high %v311_v14, %v311_v14  ;;  %v3273_v24 = vld.sshfl [vmem:[%s3595_s15 + $0x10] sm:$0x3 pattern:$0x76325410]  ;;  %v315_v42 = vld [vmem:[%s3595_s15 + $0x38] sm:$0xff] }
  0x15   : > { %v375_v11 = vrot.slane %v308_v8, %v3593_v7  ;;  %v392_v13 = vrot.slane %v309_v9, %v3593_v7  ;;  %v416_v17 = vrot.slane %v311_v14, %v3593_v7  ;;  %v426_v18 = vcombine.high %v312_v15, %v312_v15  ;;  %v314_v37 = vld [vmem:[%s3595_s15 + $0x30] sm:$0xff]  ;;  %v3274_v47 = vld.sshfl [vmem:[%s3595_s15 + $0x28] sm:$0x3 pattern:$0x76325410] }
  0x16   : > { %v433_v19 = vrot.slane %v312_v15, %v3593_v7  ;;  %v382_v20 = vrot.slane %v368_v10, %v3593_v7  ;;  %v399_v22 = vrot.slane %v385_v12, %v3593_v7  ;;  %v423_v25 = vrot.slane %v409_v16, %v3593_v7  ;;  %v317_v56 = vld [vmem:[%s3595_s15 + $0x48] sm:$0xff]  ;;  %v318_v0 = vld [vmem:[%s3595_s15 + $0x50] sm:$0xff] }
  0x17   : > { %v383_v21 = vcombine.high %v375_v11, %v375_v11  ;;  %v400_v23 = vcombine.high %v392_v13, %v392_v13  ;;  %v424_v26 = vcombine.high %v416_v17, %v416_v17  ;;  %v440_v27 = vrot.slane %v426_v18, %v3593_v7 }
  0x18   : > { %v441_v28 = vcombine.high %v433_v19, %v433_v19  ;;  %v384_v29 = vcombine.high %v382_v20, %v382_v20  ;;  %v401_v30 = vcombine.high %v399_v22, %v399_v22  ;;  %v425_v33 = vcombine.high %v423_v25, %v423_v25 }
  0x19   : > { %v778_v31 = vcombine.low %v375_v11, %v383_v21  ;;  %v795_v32 = vcombine.low %v392_v13, %v400_v23  ;;  %v812_v34 = vcombine.low %v3273_v24, %v416_v17  ;;  %v813_v35 = vcombine.low %v424_v26, %v423_v25  ;;  %v3275_v11 = vld.sshfl [vmem:[%s3595_s15 + $0x40] sm:$0x3 pattern:$0x76325410] }
  0x1a   : > { %v830_v36 = vcombine.low %v441_v28, %v440_v27  ;;  %v779_v38 = vcombine.low %v382_v20, %v384_v29  ;;  %v796_v40 = vcombine.low %v399_v22, %v401_v30  ;;  %v829_v45 = vcombine.low %v425_v33, %v433_v19  ;;  %v320_v25 = vld [vmem:[%s3595_s15 + $0x60] sm:$0xff] }
  0x1b   : > { %v786_v39 = vrot.slane %v778_v31, %v3593_v7  ;;  %v803_v41 = vrot.slane %v795_v32, %v3593_v7  ;;  %v820_v43 = vrot.slane %v812_v34, %v3593_v7  ;;  %v827_v44 = vrot.slane %v813_v35, %v3593_v7  ;;  %v3276_v34 = vld.sshfl [vmem:[%s3595_s15 + $0x58] sm:$0x3 pattern:$0x76325410] }
  0x1c   : > { %v844_v46 = vrot.slane %v830_v36, %v3593_v7  ;;  %v793_v48 = vrot.slane %v779_v38, %v3593_v7  ;;  %v810_v49 = vrot.slane %v796_v40, %v3593_v7  ;;  %v442_v50 = vcombine.high %v440_v27, %v440_v27 }
  0x1d   : > { %v450_v51 = vcombine.high %v314_v37, %v314_v37  ;;  %v828_v52 = vcombine.low %v820_v43, %v827_v44  ;;  %v837_v53 = vrot.slane %v829_v45, %v3593_v7  ;;  %v457_v54 = vrot.slane %v314_v37, %v3593_v7  ;;  %v323_v44 = vld [vmem:[%s3595_s15 + $0x78] sm:$0xff] }
  0x1e   : > { %v474_v55 = vrot.slane %v315_v42, %v3593_v7  ;;  %v794_v57 = vcombine.low %v786_v39, %v793_v48  ;;  %v811_v58 = vcombine.low %v803_v41, %v810_v49  ;;  %v846_v60 = vcombine.low %v442_v50, %v3274_v47  ;;  %v321_v39 = vld [vmem:[%s3595_s15 + $0x68] sm:$0xff] }
  0x1f   : > { %v464_v59 = vrot.slane %v450_v51, %v3593_v7  ;;  %v845_v61 = vcombine.low %v837_v53, %v844_v46  ;;  %v465_v62 = vcombine.high %v457_v54, %v457_v54  ;;  %v467_v1 = vcombine.high %v315_v42, %v315_v42 }
  0x20   : > { %v482_v63 = vcombine.high %v474_v55, %v474_v55  ;;  %v1183_v2 = vpack.c.bf16 %v811_v58, %v794_v57  ;;  %v854_v4 = vrot.slane %v846_v60, %v3593_v7  ;;  %v491_v6 = vcombine.high %v317_v56, %v317_v56 }
  0x21   : > { %v466_v3 = vcombine.high %v464_v59, %v464_v59  ;;  %v1184_v8 = vpack.c.bf16 %v845_v61, %v828_v52  ;;  %v847_v9 = vcombine.low %v457_v54, %v465_v62  ;;  %v481_v12 = vrot.slane %v467_v1, %v3593_v7  ;;  %v324_v62 = vld [vmem:[%s3595_s15 + $0x80] sm:$0xff] }
  0x22   : > { %v864_v10 = vcombine.low %v474_v55, %v482_v63  ;;  %3354 = vmatprep.mubr.msk.bf16.mxu0 %vm1203_vm1, %v1183_v2  ;;  %v498_v14 = vrot.slane %v317_v56, %v3593_v7  ;;  %v505_v15 = vrot.slane %v491_v6, %v3593_v7  ;;  %v515_v16 = vrot.slane %v318_v0, %v3593_v7  ;;  %v3277_v56 = vld.sshfl [vmem:[%s3595_s15 + $0x70] sm:$0x3 pattern:$0x76325410] }
  0x23   : > { %v863_v13 = vcombine.low %v464_v59, %v466_v3  ;;  %3355 = vmatmul.mubr.msk.bf16.vlgmr.msra.gmra.mxu0 %vm1203_vm1, %v1184_v8  ;;  %v861_v17 = vrot.slane %v847_v9, %v3593_v7  ;;  %v483_v19 = vcombine.high %v481_v12, %v481_v12  ;;  %v508_v20 = vcombine.high %v318_v0, %v318_v0  ;;  %v326_v9 = vld [vmem:[%s3595_s15 + $0x90] sm:$0xff] }
  0x24   : > { %v878_v18 = vrot.slane %v864_v10, %v3593_v7  ;;  %v506_v22 = vcombine.high %v498_v14, %v498_v14  ;;  %v507_v23 = vcombine.high %v505_v15, %v505_v15  ;;  %v881_v24 = vcombine.low %v3275_v11, %v498_v14 }
  0x25   : > { %v871_v21 = vrot.slane %v863_v13, %v3593_v7  ;;  %v862_v26 = vcombine.low %v854_v4, %v861_v17  ;;  %v880_v27 = vcombine.low %v481_v12, %v483_v19  ;;  %v522_v28 = vrot.slane %v508_v20, %v3593_v7 }
  0x26   : > { %v523_v29 = vcombine.high %v515_v16, %v515_v16  ;;  %v895_v31 = vrot.slane %v881_v24, %v3593_v7  ;;  %v897_v32 = vcombine.low %v506_v22, %v505_v15  ;;  %v898_v33 = vcombine.low %v507_v23, %v515_v16  ;;  %v3278_v24 = vld.sshfl [vmem:[%s3595_s15 + $0x88] sm:$0x3 pattern:$0x76325410] }
  0x27   : > { %v879_v30 = vcombine.low %v871_v21, %v878_v18  ;;  %v888_v35 = vrot.slane %v880_v27, %v3593_v7  ;;  %v524_v36 = vcombine.high %v522_v28, %v522_v28  ;;  %v532_v37 = vcombine.high %v320_v25, %v320_v25 }
  0x28   : > { %v539_v38 = vrot.slane %v320_v25, %v3593_v7  ;;  %v905_v41 = vrot.slane %v897_v32, %v3593_v7  ;;  %v912_v42 = vrot.slane %v898_v33, %v3593_v7  ;;  %v914_v43 = vcombine.low %v523_v29, %v522_v28  ;;  %v329_v32 = vld [vmem:[%s3595_s15 + $0xa8] sm:$0xff] }
  0x29   : > { %v1185_v40 = vpack.c.bf16 %v879_v30, %v862_v26  ;;  %v896_v45 = vcombine.low %v888_v35, %v895_v31  ;;  %v546_v46 = vrot.slane %v532_v37, %v3593_v7  ;;  %v915_v48 = vcombine.low %v524_v36, %v3276_v34  ;;  %v327_v26 = vld [vmem:[%s3595_s15 + $0x98] sm:$0xff] }
  0x2a   : > { %v547_v47 = vcombine.high %v539_v38, %v539_v38  ;;  %v913_v49 = vcombine.low %v905_v41, %v912_v42  ;;  %v922_v50 = vrot.slane %v914_v43, %v3593_v7  ;;  %v549_v51 = vcombine.high %v321_v39, %v321_v39  ;;  %v335_v42 = vld [vmem:[%s3595_s15 + $0xd8] sm:$0xff] }
  0x2b   : > { %3358 = vmatprep.mubr.msk.bf16.mxu0 %vm1203_vm1, %v1185_v40  ;;  %v556_v52 = vrot.slane %v321_v39, %v3593_v7  ;;  %v548_v53 = vcombine.high %v546_v46, %v546_v46  ;;  %v929_v54 = vrot.slane %v915_v48, %v3593_v7  ;;  %v573_v57 = vcombine.high %v323_v44, %v323_v44  ;;  %v3279_v40 = vld.sshfl [vmem:[%s3595_s15 + $0xa0] sm:$0x3 pattern:$0x76325410] }
  0x2c   : > { %v931_v55 = vcombine.low %v539_v38, %v547_v47  ;;  %v1186_v58 = vpack.c.bf16 %v913_v49, %v896_v45  ;;  %v563_v59 = vrot.slane %v549_v51, %v3593_v7  ;;  %v580_v61 = vrot.slane %v323_v44, %v3593_v7  ;;  %v336_v47 = vld [vmem:[%s3595_s15 + $0xe0] sm:$0xff] }
  0x2d   : > { %v564_v60 = vcombine.high %v556_v52, %v556_v52  ;;  %v930_v63 = vcombine.low %v922_v50, %v929_v54  ;;  %v932_v0 = vcombine.low %v546_v46, %v548_v53  ;;  %v587_v2 = vrot.slane %v573_v57, %v3593_v7 }
  0x2e   : > { %v939_v1 = vrot.slane %v931_v55, %v3593_v7  ;;  %3359 = vmatmul.mubr.msk.bf16.gmra.mxu0 %vm1203_vm1, %v1186_v58  ;;  %v565_v3 = vcombine.high %v563_v59, %v563_v59  ;;  %v588_v4 = vcombine.high %v580_v61, %v580_v61  ;;  %v965_v8 = vcombine.low %v3277_v56, %v580_v61  ;;  %v3281_v58 = vld.sshfl [vmem:[%s3595_s15 + $0xd0] sm:$0x3 pattern:$0x76325410] }
  0x2f   : > { %v948_v6 = vcombine.low %v556_v52, %v564_v60  ;;  %v946_v10 = vrot.slane %v932_v0, %v3593_v7  ;;  %v589_v11 = vcombine.high %v587_v2, %v587_v2  ;;  %v590_v12 = vcombine.high %v324_v62, %v324_v62 }
  0x30   : > { %v597_v13 = vrot.slane %v324_v62, %v3593_v7  ;;  %v949_v14 = vcombine.low %v563_v59, %v565_v3  ;;  %v966_v16 = vcombine.low %v588_v4, %v587_v2  ;;  %v973_v17 = vrot.slane %v965_v8, %v3593_v7 }
  0x31   : > { %v956_v15 = vrot.slane %v948_v6, %v3593_v7  ;;  %v947_v18 = vcombine.low %v939_v1, %v946_v10  ;;  %v604_v19 = vrot.slane %v590_v12, %v3593_v7  ;;  %v621_v21 = vrot.slane %v326_v9, %v3593_v7 }
  0x32   : > { %v605_v20 = vcombine.high %v597_v13, %v597_v13  ;;  %v963_v22 = vrot.slane %v949_v14, %v3593_v7  ;;  %v980_v23 = vrot.slane %v966_v16, %v3593_v7  ;;  %v982_v25 = vcombine.low %v589_v11, %v597_v13  ;;  %v3282_v14 = vld.sshfl [vmem:[%s3595_s15 + $0xe8] sm:$0x3 pattern:$0x76325410] }
  0x33   : > { %v614_v27 = vcombine.high %v326_v9, %v326_v9  ;;  %v1187_v28 = vpack.c.bf16 %v947_v18, %v930_v63  ;;  %v606_v29 = vcombine.high %v604_v19, %v604_v19  ;;  %v629_v30 = vcombine.high %v621_v21, %v621_v21 }
  0x34   : > { %v983_v31 = vcombine.low %v605_v20, %v604_v19  ;;  %v964_v33 = vcombine.low %v956_v15, %v963_v22  ;;  %v981_v34 = vcombine.low %v973_v17, %v980_v23  ;;  %v990_v35 = vrot.slane %v982_v25, %v3593_v7  ;;  %v330_v15 = vld [vmem:[%s3595_s15 + $0xb0] sm:$0xff] }
  0x35   : > { %v628_v36 = vrot.slane %v614_v27, %v3593_v7  ;;  %3362 = vmatprep.mubr.msk.bf16.mxu0 %vm1203_vm1, %v1187_v28  ;;  %v999_v38 = vcombine.low %v606_v29, %v3278_v24  ;;  %v1000_v39 = vcombine.low %v621_v21, %v629_v30  ;;  %v631_v41 = vcombine.high %v327_v26, %v327_v26  ;;  %v332_v29 = vld [vmem:[%s3595_s15 + $0xc0] sm:$0xff]  ;;  %v333_v30 = vld [vmem:[%s3595_s15 + $0xc8] sm:$0xff] }
  0x36   : > { %v997_v37 = vrot.slane %v983_v31, %v3593_v7  ;;  %v1188_v43 = vpack.c.bf16 %v981_v34, %v964_v33  ;;  %v638_v45 = vrot.slane %v327_v26, %v3593_v7  ;;  %v662_v46 = vrot.slane %v329_v32, %v3593_v7 }
  0x37   : > { %v630_v44 = vcombine.high %v628_v36, %v628_v36  ;;  %v1007_v49 = vrot.slane %v999_v38, %v3593_v7  ;;  %v1014_v50 = vrot.slane %v1000_v39, %v3593_v7  ;;  %v645_v51 = vrot.slane %v631_v41, %v3593_v7 }
  0x38   : > { %v998_v48 = vcombine.low %v990_v35, %v997_v37  ;;  %3363 = vmatmul.mubr.msk.bf16.gmra.mxu0 %vm1203_vm1, %v1188_v43  ;;  %v646_v52 = vcombine.high %v638_v45, %v638_v45  ;;  %v1034_v54 = vcombine.low %v3279_v40, %v662_v46  ;;  %v737_v55 = vcombine.high %v335_v42, %v335_v42  ;;  %v3280_v40 = vld.sshfl [vmem:[%s3595_s15 + $0xb8] sm:$0x3 pattern:$0x76325410] }
  0x39   : > { %v1016_v53 = vcombine.low %v628_v36, %v630_v44  ;;  %v1015_v56 = vcombine.low %v1007_v49, %v1014_v50  ;;  %v647_v57 = vcombine.high %v645_v51, %v645_v51  ;;  %v744_v59 = vrot.slane %v335_v42, %v3593_v7 }
  0x3a   : > { %v754_v60 = vcombine.high %v336_v47, %v336_v47  ;;  %v1017_v61 = vcombine.low %v638_v45, %v646_v52  ;;  %v1048_v63 = vrot.slane %v1034_v54, %v3593_v7  ;;  %v751_v0 = vrot.slane %v737_v55, %v3593_v7 }
  0x3b   : > { %v1024_v62 = vrot.slane %v1016_v53, %v3593_v7  ;;  %v1189_v1 = vpack.c.bf16 %v1015_v56, %v998_v48  ;;  %v1033_v2 = vcombine.low %v645_v51, %v647_v57  ;;  %v752_v3 = vcombine.high %v744_v59, %v744_v59 }
  0x3c   : > { %v761_v4 = vrot.slane %v336_v47, %v3593_v7  ;;  %v1031_v6 = vrot.slane %v1017_v61, %v3593_v7  ;;  %v753_v8 = vcombine.high %v751_v0, %v751_v0  ;;  %v768_v9 = vrot.slane %v754_v60, %v3593_v7 }
  0x3d   : > { %v1118_v10 = vcombine.low %v3281_v58, %v744_v59  ;;  %3366 = vmatprep.mubr.msk.bf16.mxu0 %vm1203_vm1, %v1189_v1  ;;  %v1041_v11 = vrot.slane %v1033_v2, %v3593_v7  ;;  %v1119_v13 = vcombine.low %v752_v3, %v751_v0  ;;  %v655_v16 = vcombine.high %v329_v32, %v329_v32 }
  0x3e   : > { %v769_v12 = vcombine.high %v761_v4, %v761_v4  ;;  %v1032_v17 = vcombine.low %v1024_v62, %v1031_v6  ;;  %v770_v18 = vcombine.high %v768_v9, %v768_v9  ;;  %v1135_v20 = vcombine.low %v753_v8, %v761_v4 }
  0x3f   : > { %v1126_v19 = vrot.slane %v1118_v10, %v3593_v7  ;;  %v1049_v21 = vcombine.low %v1041_v11, %v1048_v63  ;;  %v1133_v22 = vrot.slane %v1119_v13, %v3593_v7  ;;  %v669_v24 = vrot.slane %v655_v16, %v3593_v7  ;;  %v3466_v16 = vld [vmem:[%s4742_s5] sm:$0xff]  }
  0x40   : > { %v1136_v23 = vcombine.low %v769_v12, %v768_v9  ;;  %v1143_v25 = vrot.slane %v1135_v20, %v3593_v7  ;;  %v1152_v26 = vcombine.low %v770_v18, %v3282_v14  ;;  %v670_v27 = vcombine.high %v662_v46, %v662_v46  ;;  %v3465_v14 = vld [vmem:[%s4742_s5 + $0x8] ss:$0 sps:$4 sm:$0xff]  }
  0x41   : > { %v672_v28 = vcombine.high %v330_v15, %v330_v15  ;;  %v1190_v31 = vpack.c.bf16 %v1049_v21, %v1032_v17  ;;  %v1134_v32 = vcombine.low %v1126_v19, %v1133_v22  ;;  %v671_v34 = vcombine.high %v669_v24, %v669_v24  ;;  %3402 = vmatprep.subr.msk.bf16.mxu1 %vm3013_vm2, %v3465_v14  ;;  %v3740_v19 = vld [vmem:[%s4739_s2] ss:$0 sm:$0xff] }
  0x42   : > { %v1150_v33 = vrot.slane %v1136_v23, %v3593_v7  ;;  %v1159_v35 = vrot.slane %v1152_v26, %v3593_v7  ;;  %v679_v36 = vrot.slane %v330_v15, %v3593_v7  ;;  %v1050_v38 = vcombine.low %v670_v27, %v669_v24  ;;  %v3749_v23 = vld [vmem:[%s4740_s3] sm:$0xff] }
  0x43   : > { %v686_v37 = vrot.slane %v672_v28, %v3593_v7  ;;  %3367 = vmatmul.mubr.msk.bf16.gmra.mxu0 %vm1203_vm1, %v1190_v31  ;;  %v696_v41 = vcombine.high %v332_v29, %v332_v29  ;;  %v703_v42 = vrot.slane %v332_v29, %v3593_v7  ;;  %v713_v43 = vcombine.high %v333_v30, %v333_v30 }
  0x44   : > { %v1151_v39 = vcombine.low %v1143_v25, %v1150_v33  ;;  %v1194_v44 = vpack.c.bf16 %v1159_v35, %v1159_v35  ;;  %v687_v45 = vcombine.high %v679_v36, %v679_v36  ;;  %v1051_v47 = vcombine.low %v671_v34, %v679_v36 }
  0x45   : > { %v688_v46 = vcombine.high %v686_v37, %v686_v37  ;;  %v1058_v49 = vrot.slane %v1050_v38, %v3593_v7  ;;  %v710_v50 = vrot.slane %v696_v41, %v3593_v7  ;;  %v711_v51 = vcombine.high %v703_v42, %v703_v42 }
  0x46   : > { %v1193_v48 = vpack.c.bf16 %v1151_v39, %v1134_v32  ;;  %v1065_v52 = vrot.slane %v1051_v47, %v3593_v7  ;;  %v1067_v53 = vcombine.low %v687_v45, %v686_v37  ;;  %v720_v55 = vrot.slane %v333_v30, %v3593_v7 }
  0x47   : > { %v1068_v54 = vcombine.low %v688_v46, %v3280_v40  ;;  %v712_v56 = vcombine.high %v710_v50, %v710_v50  ;;  %v727_v57 = vrot.slane %v713_v43, %v3593_v7  ;;  %v1084_v58 = vcombine.low %v703_v42, %v711_v51 }
  0x48   : > { %3374 = vmatprep.mubr.msk.bf16.mxu1 %vm1203_vm1, %v1193_v48  ;;  %v1066_v59 = vcombine.low %v1058_v49, %v1065_v52  ;;  %v1075_v60 = vrot.slane %v1067_v53, %v3593_v7  ;;  %v728_v62 = vcombine.high %v720_v55, %v720_v55  ;;  %v3015_v15 = vsel %vm3013_vm2, %v3465_v14, 0 }
  0x49   : > { %3375 = vmatmul.mubr.msk.bf16.vlgmr.msra.gmra.mxu1 %vm1203_vm1, %v1194_v44  ;;  %v1082_v61 = vrot.slane %v1068_v54, %v3593_v7  ;;  %v729_v63 = vcombine.high %v727_v57, %v727_v57  ;;  %v1085_v0 = vcombine.low %v710_v50, %v712_v56  ;;  %v1092_v1 = vrot.slane %v1084_v58, %v3593_v7 }
  0x4a   : > { %v1101_v3 = vcombine.low %v720_v55, %v728_v62  ;;  %3379 = vmatpush3.bf16.msra.mxu1 %v3015_v15  ;;  %v3734_v17 = vadd.s32 16, %v3585_v5  ;;  %v1823_v18 = vstv %s3731_s20  ;;  %v2455_v21 = vsub.s32 0, %v3585_v5  ;;  %s4812_s20 = smov (!%p296_p6, %s3731_s20), 15 }
  0x4b   : > { %v1083_v2 = vcombine.low %v1075_v60, %v1082_v61  ;;  %v1099_v4 = vrot.slane %v1085_v0, %v3593_v7  ;;  %v1102_v6 = vcombine.low %v727_v57, %v729_v63  ;;  %3380 = vmatprep.subr.bf16.mxu1 %v3466_v16  ;;  %v3742_v20 = vadd.s32 1, %v1823_v18  ;;  %s3268_s12 = sshll.u32 %s4812_s20, 1 }
  0x4c   : > { %v1109_v9 = vrot.slane %v1101_v3, %v3593_v7  ;;  %vm1837_vm3 = vcmp.ge.s32.totalorder %v1823_v18, 1  ;;  %vm1847_vm4 = vcmp.le.s32.totalorder %v1823_v18, 16  ;;  %vm1902_vm5 = vcmp.le.s32.totalorder %v3734_v17, 16  ;;  %s300_s14 = sadd.s32 %s3269_s13, %s3268_s12 }
  0x4d   : > { %v1191_v8 = vpack.c.bf16 %v1083_v2, %v1066_v59  ;;  %v1100_v10 = vcombine.low %v1092_v1, %v1099_v4  ;;  %v1116_v11 = vrot.slane %v1102_v6, %v3593_v7  ;;  %v3752_v25 = vadd.s32 2, %v1823_v18  ;;  %vm3779_vm9 = vmand %vm1837_vm3, %vm1847_vm4  ;;  %s3270_s18 = sshll.u32 %s300_s14, 3 }
  0x4e   : > { %3381 = vmatpush3.bf16.msra.mxu1 %v3466_v16  ;;  %v3754_v26 = vadd.s32 3, %v1823_v18  ;;  %v3756_v27 = vadd.s32 4, %v1823_v18  ;;  %v3758_v29 = vadd.s32 5, %v1823_v18  ;;  %v2507_v30 = vsub.s32 1, %v3585_v5  ;;  %vm3802_vm11 = vmand %vm3779_vm9, %vm1902_vm5  ;;  %s4658_s22 = scalar_lea.vmem %s4744_s7, %s3270_s18 }
  0x4f   : > { %3370 = vmatprep.mubr.msk.bf16.mxu0 %vm1203_vm1, %v1191_v8  ;;  %v1117_v12 = vcombine.low %v1109_v9, %v1116_v11  ;;  %v2559_v31 = vsub.s32 2, %v3585_v5  ;;  %v2612_v32 = vsub.s32 3, %v3585_v5  ;;  %vm1838_vm7 = vcmp.ge.s32.totalorder %v3742_v20, 1  ;;  %vm3861_vm2 = vmand %vm3779_vm9, %vm1867_vm10 }
  0x50   : > { %vm1848_vm8 = vcmp.le.s32.totalorder %v3742_v20, 16  ;;  %v3766_v35 = vadd.s32 6, %v1823_v18  ;;  %v3769_v36 = vrot.slane %v3749_v23, %v2455_v21  ;;  %v3771_v38 = vadd.s32 9, %v1823_v18 }
  0x51   : > { %v1192_v13 = vpack.c.bf16 %v1117_v12, %v1100_v10  ;;  %v3773_v39 = vadd.s32 8, %v1823_v18  ;;  %v2664_v40 = vsub.s32 4, %v3585_v5  ;;  %v2716_v41 = vsub.s32 5, %v3585_v5  ;;  %vm3837_vm15 = vmand %vm1838_vm7, %vm1848_vm8 }
  0x52   : > { %v3784_v46 = vadd.s32 7, %v1823_v18  ;;  %v3788_v48 = vrot.slane %v3749_v23, %v2507_v30  ;;  %v3791_v49 = vrot.slane %v3749_v23, %v2559_v31  ;;  %v3794_v50 = vrot.slane %v3749_v23, %v2612_v32  ;;  %vm3852_vm0 = vmand %vm3837_vm15, %vm1867_vm10 }
  0x53   : > { %3371 = vmatmul.mubr.msk.bf16.gmra.mxu0 %vm1203_vm1, %v1192_v13  ;;  %v2769_v51 = vsub.s32 6, %v3585_v5  ;;  %vm1839_vm12 = vcmp.ge.s32.totalorder %v3752_v25, 1  ;;  %vm1849_vm13 = vcmp.le.s32.totalorder %v3752_v25, 16  ;;  %v3810_v58 = vrot.slane %v3749_v23, %v2664_v40 }
  0x54   : > { %v3813_v59 = vrot.slane %v3749_v23, %v2716_v41  ;;  %v2821_v60 = vsub.s32 7, %v3585_v5  ;;  %vm3871_vm3 = vmand %vm1839_vm12, %vm1849_vm13  ;;  %vm1840_vm4 = vcmp.ge.s32.totalorder %v3754_v26, 1  ;;  %vm1850_vm7 = vcmp.le.s32.totalorder %v3754_v26, 16 }
  0x55   : > { %v3820_v4 = vrot.slane %v3749_v23, %v2769_v51  ;;  %vm1911_vm8 = vmand %vm3871_vm3, %vm1902_vm5  ;;  %vm1841_vm12 = vcmp.ge.s32.totalorder %v3756_v27, 1  ;;  %vm1851_vm13 = vcmp.le.s32.totalorder %v3756_v27, 16 }
  0xe3   : > { %v3356_v22 = vpop.f32.mrf.mxu0 }
  0xe4   : > { %v1287_v24 = vadd.f32 %v3356_v22, %v3740_v19 }
  0xe5   : > { %v1278_v28 = vpop.f32.mrf.mxu0 }
  0xe6   : > { %v1374_v33 = vmax.f32 %v1287_v24, 0.0  ;;  %v1279_v34 = vadd.f32 %v3740_v19, %v1278_v28  ;;  %v3830_v24 = vrot.slane %v3749_v23, %v2821_v60 }
  0xe7   : > { %v3357_v37 = vpop.f32.mrf.mxu0 }
  0xe8   : > { %v1397_v42 = vmin.f32 %v1374_v33, 6.0  ;;  %v1372_v44 = vmax.f32 %v1279_v34, 0.0  ;;  %v1290_v45 = vadd.f32 %v3357_v37, %v3740_v19 }
  0xe9   : > { %v1281_v47 = vpop.f32.mrf.mxu0 }
  0xea   : > { %v1475_v52 = vcombine.high %v1397_v42, %v1397_v42  ;;  %v1482_v53 = vrot.slane %v1397_v42, %v3593_v7  ;;  %v1395_v54 = vmin.f32 %v1372_v44, 6.0  ;;  %v1375_v55 = vmax.f32 %v1290_v45, 0.0 }
  0xeb   : > { %v1282_v57 = vadd.f32 %v3740_v19, %v1281_v47 }
  0xec   : > { %v1489_v61 = vrot.slane %v1475_v52, %v3593_v7  ;;  %v1490_v62 = vcombine.high %v1482_v53, %v1482_v53  ;;  %v1973_v63 = vrot.slane %v1482_v53, %v3593_v7  ;;  %v1441_v0 = vcombine.high %v1395_v54, %v1395_v54 }
  0xed   : > { %v1448_v1 = vrot.slane %v1395_v54, %v3593_v7  ;;  %v1398_v2 = vmin.f32 %v1375_v55, 6.0  ;;  %v1373_v3 = vmax.f32 %v1282_v57, 0.0 }
  0xee   : > { %v1974_v6 = vcombine.low %v1490_v62, %v1489_v61  ;;  %v2375_v8 = vsel %vm3802_vm11, %v1973_v63, 0.0  ;;  %v1455_v9 = vrot.slane %v1441_v0, %v3593_v7  ;;  %v1491_v10 = vcombine.high %v1489_v61, %v1489_v61  ;;  %v3360_v11 = vpop.f32.mrf.mxu0  ;;  %vm3902_vm11 = vmand %vm3837_vm15, %vm1902_vm5 }
  0xef   : > { %2407 = vst.msk [vmem:[#allocation2 + $0x10] sm:$0x3] %vm2406_vm6, %v2375_v8  ;;  %v1456_v12 = vcombine.high %v1448_v1, %v1448_v1  ;;  %v1492_v13 = vcombine.high %v1398_v2, %v1398_v2  ;;  %v1499_v14 = vrot.slane %v1398_v2, %v3593_v7  ;;  %v1396_v15 = vmin.f32 %v1373_v3, 6.0 }
  0xf0   : > { %v1982_v16 = vrot.slane %v1974_v6, %v3593_v7  ;;  %v1457_v18 = vcombine.high %v1455_v9, %v1455_v9  ;;  %v1303_v21 = vadd.f32 %v3360_v11, %v3740_v19  ;;  %v1294_v22 = vpop.f32.mrf.mxu0 }
  0xf1   : > { %v1933_v28 = vcombine.low %v1448_v1, %v1456_v12  ;;  %v1506_v30 = vrot.slane %v1492_v13, %v3593_v7  ;;  %v1507_v31 = vcombine.high %v1499_v14, %v1499_v14  ;;  %v1975_v33 = vcombine.low %v1491_v10, %v1499_v14 }
  0xf2   : > { %v1934_v34 = vcombine.low %v1455_v9, %v1457_v18  ;;  %v1458_v37 = vcombine.high %v1396_v15, %v1396_v15  ;;  %v1465_v40 = vrot.slane %v1396_v15, %v3593_v7  ;;  %v1378_v41 = vmax.f32 %v1303_v21, 0.0  ;;  %v3361_v23 = vpop.f32.mrf.mxu0 }
  0xf3   : > { %v1941_v42 = vrot.slane %v1933_v28, %v3593_v7  ;;  %v1989_v44 = vrot.slane %v1975_v33, %v3593_v7  ;;  %v3844_v45 = vcombine.low %v1507_v31, %v1506_v30  ;;  %v1295_v47 = vadd.f32 %v3740_v19, %v1294_v22 }
  0xf4   : > { %v1948_v20 = vrot.slane %v1934_v34, %v3593_v7  ;;  %v1472_v52 = vrot.slane %v1458_v37, %v3593_v7  ;;  %v1473_v53 = vcombine.high %v1465_v40, %v1465_v40  ;;  %v1401_v54 = vmin.f32 %v1378_v41, 6.0  ;;  %v1297_v55 = vpop.f32.mrf.mxu0 }
  0xf5   : > { %v1990_v57 = vcombine.low %v1982_v16, %v1989_v44  ;;  %v1999_v60 = vrot.slane %v3844_v45, %v3593_v7  ;;  %v1376_v61 = vmax.f32 %v1295_v47, 0.0  ;;  %v1508_v62 = vcombine.high %v1506_v30, %v1506_v30 }
  0xf6   : > { %v1949_v63 = vcombine.low %v1941_v42, %v1948_v20  ;;  %v1474_v0 = vcombine.high %v1472_v52, %v1472_v52  ;;  %v1950_v1 = vcombine.low %v1465_v40, %v1473_v53  ;;  %v1543_v2 = vcombine.high %v1401_v54, %v1401_v54 }
  0xf7   : > { %v2376_v6 = vsel %vm3852_vm0, %v1990_v57, 0.0  ;;  %v1550_v8 = vrot.slane %v1401_v54, %v3593_v7  ;;  %v1399_v9 = vmin.f32 %v1376_v61, 6.0  ;;  %v1306_v10 = vadd.f32 %v3361_v23, %v3740_v19  ;;  %vm3958_vm0 = vmand %vm3871_vm3, %vm1867_vm10 }
  0xf8   : > { %v2373_v11 = vsel %vm3861_vm2, %v1949_v63, 0.0  ;;  %2408 = vst.msk [vmem:[#allocation2 + $0x18] sm:$0xff] %vm2403_vm14, %v2376_v6  ;;  %v1951_v25 = vcombine.low %v1472_v52, %v1474_v0  ;;  %v1958_v12 = vrot.slane %v1950_v1, %v3593_v7  ;;  %v1557_v13 = vrot.slane %v1543_v2, %v3593_v7  ;;  %v3364_v14 = vpop.f32.mrf.mxu0  ;;  %vm3971_vm2 = vmand %vm1841_vm12, %vm1851_vm13 }
  0xf9   : > { %2404 = vst.msk [vmem:[#allocation2] sm:$0xff] %vm2403_vm14, %v2373_v11  ;;  %v1558_v15 = vcombine.high %v1550_v8, %v1550_v8  ;;  %v1509_v16 = vcombine.high %v1399_v9, %v1399_v9  ;;  %v1516_v18 = vrot.slane %v1399_v9, %v3593_v7  ;;  %v1379_v21 = vmax.f32 %v1306_v10, 0.0 }
  0xfa   : > { %v1965_v22 = vrot.slane %v1951_v25, %v3593_v7  ;;  %v2055_v28 = vrot.slane %v1557_v13, %v3593_v7  ;;  %v1559_v30 = vcombine.high %v1557_v13, %v1557_v13  ;;  %v1298_v31 = vadd.f32 %v3740_v19, %v1297_v55  ;;  %v1310_v33 = vpop.f32.mrf.mxu0 }
  0xfb   : > { %v3895_v34 = vcombine.low %v1550_v8, %v1558_v15  ;;  %v1523_v37 = vrot.slane %v1509_v16, %v3593_v7  ;;  %v1524_v40 = vcombine.high %v1516_v18, %v1516_v18  ;;  %v1992_v41 = vcombine.low %v1508_v62, %v1516_v18 }
  0xfc   : > { %v1966_v23 = vcombine.low %v1958_v12, %v1965_v22  ;;  %v2381_v42 = vsel %vm1911_vm8, %v2055_v28, 0.0  ;;  %v1402_v45 = vmin.f32 %v1379_v21, 6.0  ;;  %v1377_v47 = vmax.f32 %v1298_v31, 0.0  ;;  %v3365_v54 = vpop.f32.mrf.mxu0  ;;  %vm1917_vm8 = vmand %vm3971_vm2, %vm1902_vm5 }
  0xfd   : > { %v2047_v20 = vrot.slane %v3895_v34, %v3593_v7  ;;  %2413 = vst.msk [vmem:[#allocation2 + $0x40] sm:$0x3] %vm2406_vm6, %v2381_v42  ;;  %v1525_v51 = vcombine.high %v1523_v37, %v1523_v37  ;;  %v2006_v52 = vrot.slane %v1992_v41, %v3593_v7  ;;  %v2014_v53 = vrot.slane %v1524_v40, %v3593_v7 }
  0xfe   : > { %v2374_v55 = vsel %vm3779_vm9, %v1966_v23, 0.0  ;;  %v1560_v56 = vcombine.high %v1402_v45, %v1402_v45  ;;  %v1567_v57 = vrot.slane %v1402_v45, %v3593_v7  ;;  %v1400_v61 = vmin.f32 %v1377_v47, 6.0  ;;  %v1313_v25 = vpop.f32.mrf.mxu0  ;;  %vm3931_vm9 = vmand %vm1840_vm4, %vm1850_vm7 }
  0xff   : > { %2405 = vst.msk [vmem:[#allocation2 + $0x8] sm:$0xff] %vm2403_vm14, %v2374_v55  ;;  %v2007_v62 = vcombine.low %v1999_v60, %v2006_v52  ;;  %v2015_v63 = vcombine.low %v1523_v37, %v1525_v51  ;;  %v2378_v0 = vsel %vm3902_vm11, %v2014_v53, 0.0  ;;  %v1319_v1 = vadd.f32 %v3364_v14, %v3740_v19 }
 0x100   : > { %2410 = vst.msk [vmem:[#allocation2 + $0x28] sm:$0x3] %vm2406_vm6, %v2378_v0  ;;  %v1574_v43 = vrot.slane %v1560_v56, %v3593_v7  ;;  %v1575_v2 = vcombine.high %v1567_v57, %v1567_v57  ;;  %v2056_v6 = vcombine.low %v1559_v30, %v1567_v57  ;;  %v1526_v8 = vcombine.high %v1400_v61, %v1400_v61 }
 0x101   : > { %v2023_v9 = vrot.slane %v2015_v63, %v3593_v7  ;;  %v2377_v10 = vsel %vm3837_vm15, %v2007_v62, 0.0  ;;  %v1533_v60 = vrot.slane %v1400_v61, %v3593_v7  ;;  %v1382_v11 = vmax.f32 %v1319_v1, 0.0  ;;  %vm3945_vm15 = vmand %vm3931_vm9, %vm1867_vm10 }
 0x102   : > { %2409 = vst.msk [vmem:[#allocation2 + $0x20] sm:$0xff] %vm2403_vm14, %v2377_v10  ;;  %v2057_v13 = vcombine.low %v1575_v2, %v1574_v43  ;;  %v2064_v14 = vrot.slane %v2056_v6, %v3593_v7  ;;  %v1540_v32 = vrot.slane %v1526_v8, %v3593_v7  ;;  %v1311_v15 = vadd.f32 %v3740_v19, %v1310_v33 }
 0x103   : > { %v1541_v16 = vcombine.high %v1533_v60, %v1533_v60  ;;  %v1405_v18 = vmin.f32 %v1382_v11, 6.0  ;;  %v1576_v21 = vcombine.high %v1574_v43, %v1574_v43  ;;  %v1322_v22 = vadd.f32 %v3365_v54, %v3740_v19  ;;  %v3368_v42 = vpop.f32.mrf.mxu0 }
 0x104   : > { %v2071_v28 = vrot.slane %v2057_v13, %v3593_v7  ;;  %v1542_v30 = vcombine.high %v1540_v32, %v1540_v32  ;;  %v1380_v26 = vmax.f32 %v1311_v15, 0.0  ;;  %v1314_v31 = vadd.f32 %v3740_v19, %v1313_v25 }
 0x105   : > { %v2016_v33 = vcombine.low %v1533_v60, %v1541_v16  ;;  %v1611_v40 = vcombine.high %v1405_v18, %v1405_v18  ;;  %v1618_v41 = vrot.slane %v1405_v18, %v3593_v7  ;;  %v1383_v23 = vmax.f32 %v1322_v22, 0.0  ;;  %v1326_v10 = vpop.f32.mrf.mxu0 }
 0x106   : > { %v2072_v44 = vcombine.low %v2064_v14, %v2071_v28  ;;  %v2032_v45 = vcombine.low %v1540_v32, %v1542_v30  ;;  %v1403_v47 = vmin.f32 %v1380_v26, 6.0  ;;  %v1381_v51 = vmax.f32 %v1314_v31, 0.0  ;;  %v2490_v5 = vld [vmem:[#allocation2 + $0x9] sm:$0xff] }
 0x107   : > { %v2030_v52 = vrot.slane %v2016_v33, %v3593_v7  ;;  %v1625_v53 = vrot.slane %v1611_v40, %v3593_v7  ;;  %v1626_v54 = vcombine.high %v1618_v41, %v1618_v41  ;;  %v1406_v55 = vmin.f32 %v1383_v23, 6.0  ;;  %v3369_v31 = vpop.f32.mrf.mxu0 }
 0x108   : > { %v2382_v56 = vsel %vm3945_vm15, %v2072_v44, 0.0  ;;  %v2040_v61 = vrot.slane %v2032_v45, %v3593_v7  ;;  %v1577_v62 = vcombine.high %v1403_v47, %v1403_v47  ;;  %v1584_v63 = vrot.slane %v1403_v47, %v3593_v7 }
 0x109   : > { %v3964_v0 = vpop.f32.mrf.mxu1  ;;  %2414 = vst.msk [vmem:[#allocation2 + $0x48] sm:$0xff] %vm2403_vm14, %v2382_v56  ;;  %v2031_v1 = vcombine.low %v2023_v9, %v2030_v52  ;;  %v1627_v43 = vcombine.high %v1625_v53, %v1625_v53  ;;  %v2114_v2 = vcombine.low %v1618_v41, %v1626_v54  ;;  %v1628_v6 = vcombine.high %v1406_v55, %v1406_v55  ;;  %v2647_v17 = vld [vmem:[#allocation2 + $0x21] sm:$0xff] }
 0x10a   : > { %v2048_v60 = vcombine.low %v2040_v61, %v2047_v20  ;;  %v1591_v11 = vrot.slane %v1577_v62, %v3593_v7  ;;  %v1592_v25 = vcombine.high %v1584_v63, %v1584_v63  ;;  %v2073_v9 = vcombine.low %v1576_v21, %v1584_v63  ;;  %v1329_v61 = vpop.f32.mrf.mxu0 }
 0x10b   : > { %v1358_v13 = vpop.f32.mrf.mxu1  ;;  %v2379_v14 = vsel %vm3958_vm0, %v2031_v1, 0.0  ;;  %v2115_v32 = vcombine.low %v1625_v53, %v1627_v43  ;;  %v2122_v27 = vrot.slane %v2114_v2, %v3593_v7  ;;  %v1635_v15 = vrot.slane %v1406_v55, %v3593_v7 }
 0x10c   : > { %vm1842_vm4 = vcmp.ge.s32.totalorder %v3758_v29, 1  ;;  %vm1852_vm7 = vcmp.le.s32.totalorder %v3758_v29, 16  ;;  %v2380_v34 = vsel %vm3871_vm3, %v2048_v60, 0.0  ;;  %2411 = vst.msk [vmem:[#allocation2 + $0x30] sm:$0xff] %vm2403_vm14, %v2379_v14  ;;  %v1593_v20 = vcombine.high %v1591_v11, %v1591_v11  ;;  %vm3999_vm3 = vmand %vm3931_vm9, %vm1902_vm5 }
 0x10d   : > { %v2074_v16 = vcombine.low %v1592_v25, %v1591_v11  ;;  %v2081_v18 = vrot.slane %v2073_v9, %v3593_v7  ;;  %v3377_v21 = vpop.f32.mrf.mxu1  ;;  %2412 = vst.msk [vmem:[#allocation2 + $0x38] sm:$0xff] %vm2403_vm14, %v2380_v34  ;;  %v2129_v22 = vrot.slane %v2115_v32, %v3593_v7  ;;  %v1642_v28 = vrot.slane %v1628_v6, %v3593_v7 }
 0x10e   : > { %v1643_v30 = vcombine.high %v1635_v15, %v1635_v15  ;;  %v2137_v26 = vrot.slane %v1635_v15, %v3593_v7  ;;  %v2096_v33 = vrot.slane %v1593_v20, %v3593_v7  ;;  %v1404_v40 = vmin.f32 %v1381_v51, 6.0 }
 0x10f   : > { %v2088_v37 = vrot.slane %v2074_v16, %v3593_v7  ;;  %v1335_v41 = vadd.f32 %v3368_v42, %v3740_v19  ;;  %v2130_v23 = vcombine.low %v2122_v27, %v2129_v22  ;;  %v1327_v47 = vadd.f32 %v3740_v19, %v1326_v10 }
 0x110   : > { %v4008_v44 = vcombine.low %v1643_v30, %v1642_v28  ;;  %v2387_v45 = vsel %vm1917_vm8, %v2137_v26, 0.0  ;;  %vm1843_vm11 = vcmp.ge.s32.totalorder %v3766_v35, 1  ;;  %vm1853_vm12 = vcmp.le.s32.totalorder %v3766_v35, 16  ;;  %vm4043_vm8 = vmand %vm1842_vm4, %vm1852_vm7 }
 0x111   : > { %v2089_v52 = vcombine.low %v2081_v18, %v2088_v37  ;;  %v2384_v53 = vsel %vm3999_vm3, %v2096_v33, 0.0  ;;  %2419 = vst.msk [vmem:[#allocation2 + $0x70] sm:$0x3] %vm2406_vm6, %v2387_v45  ;;  %v1594_v54 = vcombine.high %v1404_v40, %v1404_v40  ;;  %v1601_v51 = vrot.slane %v1404_v40, %v3593_v7  ;;  %vm4053_vm3 = vmand %vm3971_vm2, %vm1867_vm10 }
 0x112   : > { %vm1846_vm13 = vcmp.ge.s32.totalorder %v3771_v38, 1  ;;  %vm1856_vm15 = vcmp.le.s32.totalorder %v3771_v38, 16  ;;  %2416 = vst.msk [vmem:[#allocation2 + $0x58] sm:$0x3] %vm2406_vm6, %v2384_v53  ;;  %v2146_v42 = vrot.slane %v4008_v44, %v3593_v7  ;;  %v2386_v55 = vsel %vm3971_vm2, %v2130_v23, 0.0  ;;  %vm4064_vm4 = vmand %vm4043_vm8, %vm1867_vm10 }
 0x113   : > { %v1386_v56 = vmax.f32 %v1335_v41, 0.0  ;;  %v1384_v57 = vmax.f32 %v1327_v47, 0.0  ;;  %v2383_v62 = vsel %vm3931_vm9, %v2089_v52, 0.0  ;;  %2418 = vst.msk [vmem:[#allocation2 + $0x68] sm:$0xff] %vm2403_vm14, %v2386_v55  ;;  %v1608_v63 = vrot.slane %v1594_v54, %v3593_v7  ;;  %v3372_v23 = vpop.f32.mrf.mxu0  ;;  %vm4076_vm2 = vmand %vm1843_vm11, %vm1853_vm12 }
 0x114   : > { %v1609_v1 = vcombine.high %v1601_v51, %v1601_v51  ;;  %v1644_v43 = vcombine.high %v1642_v28, %v1642_v28  ;;  %2415 = vst.msk [vmem:[#allocation2 + $0x50] sm:$0xff] %vm2403_vm14, %v2383_v62  ;;  %v1338_v10 = vadd.f32 %v3369_v31, %v3740_v19  ;;  %v1367_v60 = vadd.f32 %v3964_v0, %v3740_v19  ;;  %vm4091_vm7 = vmand %vm1846_vm13, %vm1856_vm15 }
 0x115   : > { %v1409_v2 = vmin.f32 %v1386_v56, 6.0  ;;  %v1407_v6 = vmin.f32 %v1384_v57, 6.0  ;;  %v1610_v11 = vcombine.high %v1608_v63, %v1608_v63  ;;  %v1330_v12 = vadd.f32 %v3740_v19, %v1329_v61  ;;  %vm4106_vm11 = vmand %vm4076_vm2, %vm1902_vm5 }
 0x116   : > { %v2097_v25 = vcombine.low %v1601_v51, %v1609_v1  ;;  %v1359_v9 = vadd.f32 %v3740_v19, %v1358_v13  ;;  %vm1845_vm9 = vcmp.ge.s32.totalorder %v3773_v39, 1  ;;  %vm1855_vm0 = vcmp.le.s32.totalorder %v3773_v39, 16  ;;  %vm4120_vm12 = vmand %vm4091_vm7, %vm1902_vm5 }
 0x117   : > { %v1679_v14 = vcombine.high %v1409_v2, %v1409_v2  ;;  %v1686_v32 = vrot.slane %v1409_v2, %v3593_v7  ;;  %v1645_v27 = vcombine.high %v1407_v6, %v1407_v6  ;;  %v1652_v15 = vrot.slane %v1407_v6, %v3593_v7  ;;  %v1342_v6 = vpop.f32.mrf.mxu0  ;;  %vm4135_vm13 = vmand %vm1845_vm9, %vm1855_vm0 }
 0x118   : > { %v2098_v34 = vcombine.low %v1608_v63, %v1610_v11  ;;  %v2105_v20 = vrot.slane %v2097_v25, %v3593_v7  ;;  %v1387_v13 = vmax.f32 %v1338_v10, 0.0  ;;  %v1394_v16 = vmax.f32 %v1367_v60, 0.0  ;;  %vm4151_vm9 = vmand %vm4043_vm8, %vm1902_vm5 }
 0x119   : > { %v1693_v18 = vrot.slane %v1679_v14, %v3593_v7  ;;  %v1694_v21 = vcombine.high %v1686_v32, %v1686_v32  ;;  %v1659_v22 = vrot.slane %v1645_v27, %v3593_v7  ;;  %v1660_v3 = vcombine.high %v1652_v15, %v1652_v15  ;;  %vm1929_vm0 = vmand %vm4135_vm13, %vm1902_vm5 }
 0x11a   : > { %v2112_v29 = vrot.slane %v2098_v34, %v3593_v7  ;;  %v2139_v30 = vcombine.low %v1644_v43, %v1652_v15  ;;  %v1410_v26 = vmin.f32 %v1387_v13, 6.0  ;;  %v1417_v31 = vmin.f32 %v1394_v16, 6.0 }
 0x11b   : > { %v1695_v37 = vcombine.high %v1693_v18, %v1693_v18  ;;  %v4058_v33 = vcombine.low %v1686_v32, %v1694_v21  ;;  %v4068_v8 = vcombine.low %v1660_v3, %v1659_v22  ;;  %v1385_v41 = vmax.f32 %v1330_v12, 0.0 }
 0x11c   : > { %v2113_v44 = vcombine.low %v2105_v20, %v2112_v29  ;;  %v2153_v45 = vrot.slane %v2139_v30, %v3593_v7  ;;  %v1696_v47 = vcombine.high %v1410_v26, %v1410_v26  ;;  %v1703_v52 = vrot.slane %v1410_v26, %v3593_v7 }
 0x11d   : > { %v2194_v54 = vrot.slane %v4058_v33, %v3593_v7  ;;  %v2196_v51 = vcombine.low %v1693_v18, %v1695_v37  ;;  %v2163_v55 = vrot.slane %v4068_v8, %v3593_v7  ;;  %v4085_v56 = vrot.slane %v1417_v31, %v3593_v7 }
 0x11e   : > { %v2385_v57 = vsel %vm4053_vm3, %v2113_v44, 0.0  ;;  %v2154_v61 = vcombine.low %v2146_v42, %v2153_v45  ;;  %v4098_v62 = vrot.slane %v1696_v47, %v3593_v7  ;;  %v1711_v63 = vcombine.high %v1703_v52, %v1703_v52 }
 0x11f   : > { %2417 = vst.msk [vmem:[#allocation2 + $0x60] sm:$0xff] %vm2403_vm14, %v2385_v57  ;;  %v2204_v1 = vrot.slane %v2196_v51, %v3593_v7  ;;  %v1822_v43 = vcombine.high %v4085_v56, %v4085_v56  ;;  %v1408_v42 = vmin.f32 %v1385_v41, 6.0  ;;  %v1661_v2 = vcombine.high %v1659_v22, %v1659_v22 }
 0x120   : > { %v2388_v10 = vsel %vm4064_vm4, %v2154_v61, 0.0  ;;  %v2197_v60 = vcombine.low %v1703_v52, %v1711_v63  ;;  %v2219_v11 = vrot.slane %v4098_v62, %v3593_v7  ;;  %v1392_v12 = vmax.f32 %v1359_v9, 0.0  ;;  %v1361_v61 = vpop.f32.mrf.mxu1  ;;  %v3373_v63 = vpop.f32.mrf.mxu0  ;;  %vm4186_vm4 = vmand %vm4076_vm2, %vm1867_vm10 }
 0x121   : > { %2420 = vst.msk [vmem:[#allocation2 + $0x78] sm:$0xff] %vm2403_vm14, %v2388_v10  ;;  %v2342_v14 = vrot.slane %v1822_v43, %v3593_v7  ;;  %v1662_v32 = vcombine.high %v1408_v42, %v1408_v42  ;;  %v1669_v27 = vrot.slane %v1408_v42, %v3593_v7  ;;  %v1351_v15 = vadd.f32 %v3372_v23, %v3740_v19 }
 0x122   : > { %v2211_v34 = vrot.slane %v2197_v60, %v3593_v7  ;;  %v2393_v20 = vsel %vm4106_vm11, %v2219_v11, 0.0  ;;  %v1415_v13 = vmin.f32 %v1392_v12, 6.0  ;;  %v1343_v16 = vadd.f32 %v3740_v19, %v1342_v6  ;;  %vm4239_vm11 = vmand %vm4135_vm13, %vm1867_vm10 }
 0x123   : > { %2425 = vst.msk [vmem:[#allocation2 + $0xa0] sm:$0x3] %vm2406_vm6, %v2393_v20  ;;  %v2402_v18 = vsel %vm4120_vm12, %v2342_v14, 0.0  ;;  %v1676_v21 = vrot.slane %v1662_v32, %v3593_v7  ;;  %v1677_v22 = vcombine.high %v1669_v27, %v1669_v27  ;;  %v2156_v3 = vcombine.low %v1661_v2, %v1669_v27  ;;  %v1345_v27 = vpop.f32.mrf.mxu0  ;;  %vm4255_vm12 = vmand %vm4091_vm7, %vm1867_vm10 }
 0x124   : > { %vm1844_vm15 = vcmp.ge.s32.totalorder %v3784_v46, 1  ;;  %vm1854_vm3 = vcmp.le.s32.totalorder %v3784_v46, 16  ;;  %v2212_v39 = vcombine.low %v2204_v1, %v2211_v34  ;;  %2434 = vst.msk [vmem:[#allocation2 + $0xe8] sm:$0x3] %vm2406_vm6, %v2402_v18  ;;  %v1781_v29 = vcombine.high %v1415_v13, %v1415_v13 }
 0x125   : > { %v1788_v30 = vrot.slane %v1415_v13, %v3593_v7  ;;  %v1390_v26 = vmax.f32 %v1351_v15, 0.0  ;;  %v1678_v31 = vcombine.high %v1676_v21, %v1676_v21  ;;  %v2170_v37 = vrot.slane %v2156_v3, %v3593_v7 }
 0x126   : > { %v2178_v40 = vrot.slane %v1677_v22, %v3593_v7  ;;  %v1388_v8 = vmax.f32 %v1343_v16, 0.0  ;;  %v2392_v41 = vsel %vm4076_vm2, %v2212_v39, 0.0  ;;  %v4165_v23 = vrot.slane %v1781_v29, %v3593_v7  ;;  %v2437_v29 = vld [vmem:[#allocation2] sm:$0xff] }
 0x127   : > { %v1796_v44 = vcombine.high %v1788_v30, %v1788_v30  ;;  %v2301_v45 = vrot.slane %v1788_v30, %v3593_v7  ;;  %2424 = vst.msk [vmem:[#allocation2 + $0x98] sm:$0xff] %vm2403_vm14, %v2392_v41  ;;  %v2171_v47 = vcombine.low %v2163_v55, %v2170_v37  ;;  %v2179_v52 = vcombine.low %v1676_v21, %v1678_v31  ;;  %v2438_v30 = vld [vmem:[#allocation2 + $0x8] sm:$0xff] }
 0x128   : > { %v2390_v51 = vsel %vm4151_vm9, %v2178_v40, 0.0  ;;  %v1413_v57 = vmin.f32 %v1390_v26, 6.0  ;;  %v1411_v43 = vmin.f32 %v1388_v8, 6.0  ;;  %v1712_v42 = vcombine.high %v4098_v62, %v4098_v62 }
 0x129   : > { %2422 = vst.msk [vmem:[#allocation2 + $0x88] sm:$0x3] %vm2406_vm6, %v2390_v51  ;;  %v4173_v1 = vcombine.low %v1796_v44, %v4165_v23  ;;  %v2399_v38 = vsel %vm1929_vm0, %v2301_v45, 0.0  ;;  %v2187_v2 = vrot.slane %v2179_v52, %v3593_v7  ;;  %v2389_v55 = vsel %vm4043_vm8, %v2171_v47, 0.0  ;;  %vm4212_vm8 = vmand %vm1844_vm15, %vm1854_vm3  ;;  %v2646_v51 = vld [vmem:[#allocation2 + $0x19] sm:$0xff] }
 0x12a   : > { %2431 = vst.msk [vmem:[#allocation2 + $0xd0] sm:$0x3] %vm2406_vm6, %v2399_v38  ;;  %v1747_v6 = vcombine.high %v1413_v57, %v1413_v57  ;;  %v1754_v10 = vrot.slane %v1413_v57, %v3593_v7  ;;  %v1713_v0 = vcombine.high %v1411_v43, %v1411_v43  ;;  %v1720_v11 = vrot.slane %v1411_v43, %v3593_v7  ;;  %vm4229_vm2 = vmand %vm4212_vm8, %vm1867_vm10 }
 0x12b   : > { %2421 = vst.msk [vmem:[#allocation2 + $0x80] sm:$0xff] %vm2403_vm14, %v2389_v55  ;;  %v2310_v62 = vrot.slane %v4173_v1, %v3593_v7  ;;  %v1362_v25 = vadd.f32 %v3740_v19, %v1361_v61  ;;  %v2195_v12 = vcombine.low %v2187_v2, %v2194_v54  ;;  %v1797_v32 = vcombine.high %v4165_v23, %v4165_v23  ;;  %vm4276_vm10 = vmand %vm4212_vm8, %vm1902_vm5 }
 0x12c   : > { %v1761_v53 = vrot.slane %v1747_v6, %v3593_v7  ;;  %v1762_v14 = vcombine.high %v1754_v10, %v1754_v10  ;;  %v4202_v15 = vrot.slane %v1713_v0, %v3593_v7  ;;  %v1728_v34 = vcombine.high %v1720_v11, %v1720_v11  ;;  %v2489_v0 = vld [vmem:[#allocation2 + $0x1] sm:$0xff] }
 0x12d   : > { %v2220_v20 = vcombine.low %v1712_v42, %v1720_v11  ;;  %v1393_v13 = vmax.f32 %v1362_v25, 0.0  ;;  %v2391_v16 = vsel %vm4186_vm4, %v2195_v12, 0.0  ;;  %v1354_v33 = vadd.f32 %v3373_v63, %v3740_v19  ;;  %v4307_v25 = vld [vmem:[#allocation2 + $0x39] sm:$0xff] }
 0x12e   : > { %v1763_v18 = vcombine.high %v1761_v53, %v1761_v53  ;;  %v2261_v21 = vcombine.low %v1754_v10, %v1762_v14  ;;  %2423 = vst.msk [vmem:[#allocation2 + $0x90] sm:$0xff] %vm2403_vm14, %v2391_v16  ;;  %v2221_v22 = vcombine.low %v1728_v34, %v4202_v15  ;;  %v1346_v28 = vadd.f32 %v3740_v19, %v1345_v27 }
 0x12f   : > { %v2228_v3 = vrot.slane %v2220_v20, %v3593_v7  ;;  %v1416_v39 = vmin.f32 %v1393_v13, 6.0  ;;  %v1391_v37 = vmax.f32 %v1354_v33, 0.0  ;;  %v1729_v46 = vcombine.high %v4202_v15, %v4202_v15 }
 0x130   : > { %v2262_v26 = vcombine.low %v1761_v53, %v1763_v18  ;;  %v2269_v31 = vrot.slane %v2261_v21, %v3593_v7  ;;  %v2235_v40 = vrot.slane %v2221_v22, %v3593_v7  ;;  %v1389_v23 = vmax.f32 %v1346_v28, 0.0 }
 0x131   : > { %v1798_v8 = vcombine.high %v1416_v39, %v1416_v39  ;;  %v1805_v41 = vrot.slane %v1416_v39, %v3593_v7  ;;  %v1414_v45 = vmin.f32 %v1391_v37, 6.0  ;;  %v2457_v47 = vmul.f32 %v3769_v36, %v2437_v29 }
 0x132   : > { %v2276_v44 = vrot.slane %v2262_v26, %v3593_v7  ;;  %v2458_v52 = vmul.f32 %v3769_v36, %v2438_v30  ;;  %v2236_v57 = vcombine.low %v2228_v3, %v2235_v40  ;;  %v1412_v2 = vmin.f32 %v1389_v23, 6.0  ;;  %v2541_v3 = vld [vmem:[#allocation2 + $0x2] sm:$0xff]  ;;  %v2542_v30 = vld [vmem:[#allocation2 + $0xa] sm:$0xff]  ;;  %v2594_v26 = vld [vmem:[#allocation2 + $0x18] sm:$0xff] }
 0x133   : > { %v1812_v61 = vrot.slane %v1798_v8, %v3593_v7  ;;  %v1813_v63 = vcombine.high %v1805_v41, %v1805_v41  ;;  %v2303_v1 = vcombine.low %v1797_v32, %v1805_v41  ;;  %v1764_v43 = vcombine.high %v1414_v45, %v1414_v45  ;;  %v2595_v41 = vld [vmem:[#allocation2 + $0x20] sm:$0xff] }
 0x134   : > { %v2277_v38 = vcombine.low %v2269_v31, %v2276_v44  ;;  %v1771_v42 = vrot.slane %v1414_v45, %v3593_v7  ;;  %v2394_v55 = vsel %vm4229_vm2, %v2236_v57, 0.0  ;;  %v1730_v14 = vcombine.high %v1412_v2, %v1412_v2 }
 0x135   : > { %v1814_v6 = vcombine.high %v1812_v61, %v1812_v61  ;;  %v2317_v10 = vrot.slane %v2303_v1, %v3593_v7  ;;  %v2319_v60 = vcombine.low %v1813_v63, %v1812_v61  ;;  %2426 = vst.msk [vmem:[#allocation2 + $0xa8] sm:$0xff] %vm2403_vm14, %v2394_v55  ;;  %v1778_v12 = vrot.slane %v1764_v43, %v3593_v7  ;;  %v4300_v55 = vld [vmem:[#allocation2 + $0x38] sm:$0xff] }
 0x136   : > { %v2397_v11 = vsel %vm4239_vm11, %v2277_v38, 0.0  ;;  %v1779_v53 = vcombine.high %v1771_v42, %v1771_v42  ;;  %v1737_v34 = vrot.slane %v1412_v2, %v3593_v7  ;;  %v1744_v16 = vrot.slane %v1730_v14, %v3593_v7  ;;  %v2699_v38 = vld [vmem:[#allocation2 + $0x22] sm:$0xff]  ;;  %v4298_v2 = vld [vmem:[#allocation2 + $0x30] sm:$0xff] }
 0x137   : > { %2429 = vst.msk [vmem:[#allocation2 + $0xc0] sm:$0xff] %vm2403_vm14, %v2397_v11  ;;  %v2318_v32 = vcombine.low %v2310_v62, %v2317_v10  ;;  %v2320_v27 = vcombine.low %v1814_v6, %v4085_v56  ;;  %v2327_v15 = vrot.slane %v2319_v60, %v3593_v7  ;;  %v1780_v20 = vcombine.high %v1778_v12, %v1778_v12  ;;  %v4305_v11 = vld [vmem:[#allocation2 + $0x31] sm:$0xff] }
 0x138   : > { %v2278_v13 = vcombine.low %v1771_v42, %v1779_v53  ;;  %v2509_v18 = vmul.f32 %v3788_v48, %v2489_v0  ;;  %v1745_v22 = vcombine.high %v1737_v34, %v1737_v34  ;;  %v2237_v62 = vcombine.low %v1729_v46, %v1737_v34  ;;  %v4295_v42 = vld [vmem:[%s4740_s3 + $0x8] ss:$0 sm:$0xff] }
 0x139   : > { %v2334_v21 = vrot.slane %v2320_v27, %v3593_v7  ;;  %v2400_v33 = vsel %vm4255_vm12, %v2318_v32, 0.0  ;;  %v2279_v56 = vcombine.low %v1778_v12, %v1780_v20  ;;  %v1746_v28 = vcombine.high %v1744_v16, %v1744_v16  ;;  %v4309_v12 = vld [vmem:[#allocation2 + $0x32] sm:$0xff] }
 0x13a   : > { %2432 = vst.msk [vmem:[#allocation2 + $0xd8] sm:$0xff] %vm2403_vm14, %v2400_v33  ;;  %v2286_v39 = vrot.slane %v2278_v13, %v3593_v7  ;;  %v2510_v29 = vmul.f32 %v3788_v48, %v2490_v5  ;;  %v2238_v46 = vcombine.low %v1745_v22, %v1744_v16  ;;  %v2245_v40 = vrot.slane %v2237_v62, %v3593_v7 }
 0x13b   : > { %v2335_v31 = vcombine.low %v2327_v15, %v2334_v21  ;;  %v2525_v8 = vadd.f32 %v2509_v18, %v2457_v47  ;;  %v2293_v23 = vrot.slane %v2279_v56, %v3593_v7  ;;  %v2260_v44 = vrot.slane %v1746_v28, %v3593_v7  ;;  %v2698_v47 = vld [vmem:[#allocation2 + $0x1a] sm:$0xff] }
 0x13c   : > { %v2526_v19 = vadd.f32 %v2510_v29, %v2458_v52  ;;  %v2561_v45 = vmul.f32 %v3791_v49, %v2541_v3  ;;  %v2252_v61 = vrot.slane %v2238_v46, %v3593_v7  ;;  %v2562_v63 = vmul.f32 %v3791_v49, %v2542_v30  ;;  %v2856_v15 = vld [vmem:[#allocation2 + $0x3a] sm:$0xff]  ;;  %v4340_v46 = vld [vmem:[#allocation2 + $0x48] sm:$0xff] }
 0x13d   : > { %v2401_v57 = vsel %vm4091_vm7, %v2335_v31, 0.0  ;;  %v2614_v1 = vmul.f32 %v3794_v50, %v2594_v26  ;;  %v2294_v43 = vcombine.low %v2286_v39, %v2293_v23  ;;  %v2396_v52 = vsel %vm4276_vm10, %v2260_v44, 0.0  ;;  %v4344_v23 = vld [vmem:[#allocation2 + $0x50] sm:$0xff] }
 0x13e   : > { %2433 = vst.msk [vmem:[#allocation2 + $0xe0] sm:$0xff] %vm2403_vm14, %v2401_v57  ;;  %v2577_v35 = vadd.f32 %v2561_v45, %v2525_v8  ;;  %v2615_v7 = vmul.f32 %v3794_v50, %v2595_v41  ;;  %v2253_v6 = vcombine.low %v2245_v40, %v2252_v61  ;;  %v2578_v10 = vadd.f32 %v2562_v63, %v2526_v19  ;;  %v4346_v44 = vld [vmem:[#allocation2 + $0x49] sm:$0xff]  ;;  %v4348_v19 = vld [vmem:[#allocation2 + $0x51] sm:$0xff] }
 0x13f   : > { %2428 = vst.msk [vmem:[#allocation2 + $0xb8] sm:$0x3] %vm2406_vm6, %v2396_v52  ;;  %v2666_v60 = vmul.f32 %v3810_v58, %v2646_v51  ;;  %v2667_v0 = vmul.f32 %v3810_v58, %v2647_v17  ;;  %v2398_v53 = vsel %vm4135_vm13, %v2294_v43, 0.0  ;;  %v2718_v32 = vmul.f32 %v3813_v59, %v2698_v47  ;;  %v4355_v61 = vld [vmem:[#allocation2 + $0x4a] sm:$0xff]  ;;  %v4359_v43 = vld [vmem:[#allocation2 + $0x52] sm:$0xff] }
 0x140   : > { %v2630_v14 = vadd.f32 %v2614_v1, %v2577_v35  ;;  %v2719_v27 = vmul.f32 %v3813_v59, %v2699_v38  ;;  %2430 = vst.msk [vmem:[#allocation2 + $0xc8] sm:$0xff] %vm2403_vm14, %v2398_v53  ;;  %v2395_v34 = vsel %vm4212_vm8, %v2253_v6, 0.0  ;;  %v2631_v5 = vadd.f32 %v2615_v7, %v2578_v10  ;;  %v4364_v35 = vld [vmem:[%s4741_s4] ss:$0 sm:$0xff] }
 0x141   : > { %v2771_v20 = vmul.f32 %v3820_v4, %v4298_v2  ;;  %v2772_v13 = vmul.f32 %v3820_v4, %v4300_v55  ;;  %2427 = vst.msk [vmem:[#allocation2 + $0xb0] sm:$0xff] %vm2403_vm14, %v2395_v34  ;;  %v2823_v16 = vmul.f32 %v3830_v24, %v4305_v11  ;;  %v2824_v18 = vmul.f32 %v3830_v24, %v4307_v25 }
 0x142   : > { %v2682_v9 = vadd.f32 %v2666_v60, %v2630_v14  ;;  %v2875_v54 = vmul.f32 %v4295_v42, %v4309_v12  ;;  %v2683_v21 = vadd.f32 %v2667_v0, %v2631_v5  ;;  %v2876_v33 = vmul.f32 %v4295_v42, %v2856_v15 }
 0x143   : > { %v2459_v22 = vmul.f32 %v2594_v26, %v3769_v36  ;;  %v2460_v62 = vmul.f32 %v2595_v41, %v3769_v36  ;;  %v2511_v56 = vmul.f32 %v2646_v51, %v3788_v48  ;;  %v2512_v39 = vmul.f32 %v2647_v17, %v3788_v48 }
 0x144   : > { %v2734_v3 = vadd.f32 %v2718_v32, %v2682_v9  ;;  %v2563_v28 = vmul.f32 %v2698_v47, %v3791_v49  ;;  %v2735_v29 = vadd.f32 %v2719_v27, %v2683_v21  ;;  %v2564_v30 = vmul.f32 %v2699_v38, %v3791_v49 }
 0x145   : > { %v2616_v31 = vmul.f32 %v4298_v2, %v3794_v50  ;;  %v2617_v37 = vmul.f32 %v4300_v55, %v3794_v50  ;;  %v2527_v40 = vadd.f32 %v2511_v56, %v2459_v22  ;;  %v2528_v8 = vadd.f32 %v2512_v39, %v2460_v62 }
 0x146   : > { %v2787_v26 = vadd.f32 %v2771_v20, %v2734_v3  ;;  %v2668_v41 = vmul.f32 %v4305_v11, %v3810_v58  ;;  %v2788_v45 = vadd.f32 %v2772_v13, %v2735_v29  ;;  %v2669_v51 = vmul.f32 %v4307_v25, %v3810_v58 }
 0x147   : > { %v2720_v17 = vmul.f32 %v4309_v12, %v3813_v59  ;;  %v2721_v57 = vmul.f32 %v2856_v15, %v3813_v59  ;;  %v2579_v1 = vadd.f32 %v2563_v28, %v2527_v40  ;;  %v2580_v47 = vadd.f32 %v2564_v30, %v2528_v8  ;;  %v4399_v40 = vld [vmem:[#allocation2 + $0x68] sm:$0xff] }
 0x148   : > { %v2839_v63 = vadd.f32 %v2823_v16, %v2787_v26  ;;  %v2773_v38 = vmul.f32 %v3820_v4, %v4340_v46  ;;  %v2840_v52 = vadd.f32 %v2824_v18, %v2788_v45  ;;  %v2774_v7 = vmul.f32 %v3820_v4, %v4344_v23 }
 0x149   : > { %v2825_v6 = vmul.f32 %v3830_v24, %v4346_v44  ;;  %v2826_v10 = vmul.f32 %v3830_v24, %v4348_v19  ;;  %v2632_v0 = vadd.f32 %v2616_v31, %v2579_v1  ;;  %v2633_v53 = vadd.f32 %v2617_v37, %v2580_v47  ;;  %v4393_v31 = vld [vmem:[#allocation2 + $0x60] sm:$0xff] }
 0x14a   : > { %v2891_v60 = vadd.f32 %v2875_v54, %v2839_v63  ;;  %v2877_v14 = vmul.f32 %v4295_v42, %v4355_v61  ;;  %v2892_v32 = vadd.f32 %v2876_v33, %v2840_v52  ;;  %v2878_v27 = vmul.f32 %v4295_v42, %v4359_v43  ;;  %v4407_v63 = vld [vmem:[#allocation2 + $0x62] sm:$0xff] }
 0x14b   : > { %v2461_v34 = vmul.f32 %v4298_v2, %v3769_v36  ;;  %v2462_v5 = vmul.f32 %v4300_v55, %v3769_v36  ;;  %v2684_v13 = vadd.f32 %v2668_v41, %v2632_v0  ;;  %v2685_v9 = vadd.f32 %v2669_v51, %v2633_v53 }
 0x14c   : > { %v2914_v20 = vadd.f32 %v4364_v35, %v2891_v60  ;;  %v2513_v16 = vmul.f32 %v4305_v11, %v3788_v48  ;;  %v2915_v18 = vadd.f32 %v4364_v35, %v2892_v32  ;;  %v2514_v54 = vmul.f32 %v4307_v25, %v3788_v48 }
 0x14d   : > { %v2565_v21 = vmul.f32 %v4309_v12, %v3791_v49  ;;  %v2566_v2 = vmul.f32 %v2856_v15, %v3791_v49  ;;  %v2736_v22 = vadd.f32 %v2720_v17, %v2684_v13  ;;  %v2737_v55 = vadd.f32 %v2721_v57, %v2685_v9  ;;  %v4403_v17 = vld [vmem:[#allocation2 + $0x61] sm:$0xff]  ;;  %v4405_v57 = vld [vmem:[#allocation2 + $0x69] sm:$0xff] }
 0x14e   : > { %v2930_v33 = vmax.f32 %v2914_v20, 0.0  ;;  %v2529_v62 = vadd.f32 %v2513_v16, %v2461_v34  ;;  %v2931_v3 = vmax.f32 %v2915_v18, 0.0  ;;  %v2530_v56 = vadd.f32 %v2514_v54, %v2462_v5 }
 0x14f   : > { %v2618_v39 = vmul.f32 %v4340_v46, %v3794_v50  ;;  %v2619_v11 = vmul.f32 %v4344_v23, %v3794_v50  ;;  %v2789_v29 = vadd.f32 %v2773_v38, %v2736_v22  ;;  %v2790_v25 = vadd.f32 %v2774_v7, %v2737_v55  ;;  %v4413_v7 = vld [vmem:[#allocation2 + $0x6a] sm:$0xff] }
 0x150   : > { %v2946_v28 = vmin.f32 %v2930_v33, 6.0  ;;  %v2581_v30 = vadd.f32 %v2565_v21, %v2529_v62  ;;  %v2947_v12 = vmin.f32 %v2931_v3, 6.0  ;;  %v2582_v15 = vadd.f32 %v2566_v2, %v2530_v56 }
 0x151   : > { %v2670_v37 = vmul.f32 %v4346_v44, %v3810_v58  ;;  %v2671_v26 = vmul.f32 %v4348_v19, %v3810_v58  ;;  %v2841_v8 = vadd.f32 %v2825_v6, %v2789_v29  ;;  %v2842_v41 = vadd.f32 %v2826_v10, %v2790_v25  ;;  %v4444_v25 = vld [vmem:[#allocation2 + $0x78] sm:$0xff] }
 0x152   : > { %v2634_v45 = vadd.f32 %v2618_v39, %v2581_v30  ;;  %v2722_v51 = vmul.f32 %v4355_v61, %v3813_v59  ;;  %v2962_v1 = vpack.c.bf16 %v2947_v12, %v2946_v28  ;;  %v2635_v47 = vadd.f32 %v2619_v11, %v2582_v15  ;;  %v4448_v15 = vld [vmem:[#allocation2 + $0x80] sm:$0xff] }
 0x153   : > { %v2723_v38 = vmul.f32 %v4359_v43, %v3813_v59  ;;  %v2775_v52 = vmul.f32 %v3820_v4, %v4393_v31  ;;  %v2893_v6 = vadd.f32 %v2877_v14, %v2841_v8  ;;  %v2894_v10 = vadd.f32 %v2878_v27, %v2842_v41 }
 0x154   : > { %v2686_v60 = vadd.f32 %v2670_v37, %v2634_v45  ;;  %v2776_v0 = vmul.f32 %v3820_v4, %v4399_v40  ;;  %3382 = vmatprep.mubr.msk.bf16.mxu1 %vm2403_vm14, %v2962_v1  ;;  %v2687_v53 = vadd.f32 %v2671_v26, %v2635_v47  ;;  %v2827_v32 = vmul.f32 %v3830_v24, %v4403_v17  ;;  %v4450_v37 = vld [vmem:[#allocation2 + $0x79] sm:$0xff] }
 0x155   : > { %v2828_v34 = vmul.f32 %v3830_v24, %v4405_v57  ;;  %v2879_v5 = vmul.f32 %v4295_v42, %v4407_v63  ;;  %v2916_v20 = vadd.f32 %v4364_v35, %v2893_v6  ;;  %v2917_v14 = vadd.f32 %v4364_v35, %v2894_v10  ;;  %v4458_v1 = vld [vmem:[#allocation2 + $0x7a] sm:$0xff]  ;;  %v4466_v10 = vld [vmem:[#allocation2 + $0x82] sm:$0xff] }
 0x156   : > { %v2738_v27 = vadd.f32 %v2722_v51, %v2686_v60  ;;  %v2880_v13 = vmul.f32 %v4295_v42, %v4413_v7  ;;  %v2739_v9 = vadd.f32 %v2723_v38, %v2687_v53  ;;  %v2463_v16 = vmul.f32 %v4340_v46, %v3769_v36  ;;  %v4456_v51 = vld [vmem:[#allocation2 + $0x81] sm:$0xff] }
 0x157   : > { %v2464_v18 = vmul.f32 %v4344_v23, %v3769_v36  ;;  %v2515_v54 = vmul.f32 %v4346_v44, %v3788_v48  ;;  %v2932_v21 = vmax.f32 %v2916_v20, 0.0  ;;  %v2933_v2 = vmax.f32 %v2917_v14, 0.0 }
 0x158   : > { %v2791_v33 = vadd.f32 %v2775_v52, %v2738_v27  ;;  %v2516_v22 = vmul.f32 %v4348_v19, %v3788_v48  ;;  %v2792_v55 = vadd.f32 %v2776_v0, %v2739_v9  ;;  %v2567_v3 = vmul.f32 %v4355_v61, %v3791_v49 }
 0x159   : > { %v2531_v62 = vadd.f32 %v2515_v54, %v2463_v16  ;;  %v2568_v46 = vmul.f32 %v4359_v43, %v3791_v49  ;;  %v2948_v56 = vmin.f32 %v2932_v21, 6.0  ;;  %v2949_v39 = vmin.f32 %v2933_v2, 6.0 }
 0x15a   : > { %v2843_v23 = vadd.f32 %v2827_v32, %v2791_v33  ;;  %v2532_v11 = vadd.f32 %v2516_v22, %v2464_v18  ;;  %v2844_v28 = vadd.f32 %v2828_v34, %v2792_v55  ;;  %v2620_v29 = vmul.f32 %v4393_v31, %v3794_v50 }
 0x15b   : > { %v2583_v44 = vadd.f32 %v2567_v3, %v2531_v62  ;;  %v2621_v19 = vmul.f32 %v4399_v40, %v3794_v50  ;;  %v2963_v30 = vpack.c.bf16 %v2949_v39, %v2948_v56  ;;  %v2672_v43 = vmul.f32 %v4403_v17, %v3810_v58 }
 0x15c   : > { %v2895_v12 = vadd.f32 %v2879_v5, %v2843_v23  ;;  %v2584_v61 = vadd.f32 %v2568_v46, %v2532_v11  ;;  %v2896_v26 = vadd.f32 %v2880_v13, %v2844_v28  ;;  %v2673_v41 = vmul.f32 %v4405_v57, %v3810_v58  ;;  %v4495_v11 = vld [vmem:[#allocation2 + $0x90] sm:$0xff] }
 0x15d   : > { %v2636_v8 = vadd.f32 %v2620_v29, %v2583_v44  ;;  %v2724_v45 = vmul.f32 %v4407_v63, %v3813_v59  ;;  %3383 = vmatmul.mubr.msk.bf16.vlgmr.msra.gmra.mxu1 %vm2403_vm14, %v2963_v30  ;;  %v2725_v52 = vmul.f32 %v4413_v7, %v3813_v59  ;;  %v2777_v6 = vmul.f32 %v3820_v4, %v4444_v25  ;;  %v4503_v29 = vld [vmem:[#allocation2 + $0x91] sm:$0xff] }
 0x15e   : > { %v2918_v47 = vadd.f32 %v4364_v35, %v2895_v12  ;;  %v2637_v38 = vadd.f32 %v2621_v19, %v2584_v61  ;;  %v2919_v60 = vadd.f32 %v4364_v35, %v2896_v26  ;;  %v2778_v53 = vmul.f32 %v3820_v4, %v4448_v15  ;;  %v4505_v19 = vld [vmem:[#allocation2 + $0x99] sm:$0xff] }
 0x15f   : > { %v2688_v0 = vadd.f32 %v2672_v43, %v2636_v8  ;;  %v2829_v32 = vmul.f32 %v3830_v24, %v4450_v37  ;;  %v2830_v20 = vmul.f32 %v3830_v24, %v4456_v51  ;;  %v2881_v14 = vmul.f32 %v4295_v42, %v4458_v1  ;;  %v4512_v26 = vld [vmem:[#allocation2 + $0x92] sm:$0xff]  ;;  %v4514_v8 = vld [vmem:[#allocation2 + $0x9a] sm:$0xff] }
 0x160   : > { %v2934_v34 = vmax.f32 %v2918_v47, 0.0  ;;  %v2689_v5 = vadd.f32 %v2673_v41, %v2637_v38  ;;  %v2935_v27 = vmax.f32 %v2919_v60, 0.0  ;;  %v2882_v9 = vmul.f32 %v4295_v42, %v4466_v10 }
 0x161   : > { %v2740_v13 = vadd.f32 %v2724_v45, %v2688_v0  ;;  %v2465_v16 = vmul.f32 %v4393_v31, %v3769_v36  ;;  %v2466_v21 = vmul.f32 %v4399_v40, %v3769_v36  ;;  %v2517_v2 = vmul.f32 %v4403_v17, %v3788_v48 }
 0x162   : > { %v2950_v18 = vmin.f32 %v2934_v34, 6.0  ;;  %v2741_v54 = vadd.f32 %v2725_v52, %v2689_v5  ;;  %v2951_v33 = vmin.f32 %v2935_v27, 6.0  ;;  %v2518_v55 = vmul.f32 %v4405_v57, %v3788_v48  ;;  %v4497_v57 = vld [vmem:[#allocation2 + $0x98] sm:$0xff] }
 0x163   : > { %v2793_v22 = vadd.f32 %v2777_v6, %v2740_v13  ;;  %v2569_v62 = vmul.f32 %v4407_v63, %v3791_v49  ;;  %v2533_v46 = vadd.f32 %v2517_v2, %v2465_v16  ;;  %v2570_v31 = vmul.f32 %v4413_v7, %v3791_v49 }
 0x164   : > { %v2794_v3 = vadd.f32 %v2778_v53, %v2741_v54  ;;  %v2622_v56 = vmul.f32 %v4444_v25, %v3794_v50  ;;  %v2964_v40 = vpack.c.bf16 %v2951_v33, %v2950_v18  ;;  %v2534_v23 = vadd.f32 %v2518_v55, %v2466_v21 }
 0x165   : > { %v2845_v39 = vadd.f32 %v2829_v32, %v2793_v22  ;;  %v2623_v17 = vmul.f32 %v4448_v15, %v3794_v50  ;;  %v2585_v63 = vadd.f32 %v2569_v62, %v2533_v46  ;;  %v2674_v44 = vmul.f32 %v4450_v37, %v3810_v58 }
 0x166   : > { %v2846_v28 = vadd.f32 %v2830_v20, %v2794_v3  ;;  %v2675_v7 = vmul.f32 %v4456_v51, %v3810_v58  ;;  %3386 = vmatprep.mubr.msk.bf16.mxu1 %vm2403_vm14, %v2964_v40  ;;  %v2586_v12 = vadd.f32 %v2570_v31, %v2534_v23  ;;  %v2726_v61 = vmul.f32 %v4458_v1, %v3813_v59  ;;  %v4548_v31 = vld [vmem:[#allocation2 + $0xa8] sm:$0xff] }
 0x167   : > { %v2897_v30 = vadd.f32 %v2881_v14, %v2845_v39  ;;  %v2727_v43 = vmul.f32 %v4466_v10, %v3813_v59  ;;  %v2638_v45 = vadd.f32 %v2622_v56, %v2585_v63  ;;  %v2779_v47 = vmul.f32 %v3820_v4, %v4495_v11  ;;  %v4550_v39 = vld [vmem:[#allocation2 + $0xb0] sm:$0xff] }
 0x168   : > { %v2898_v41 = vadd.f32 %v2882_v9, %v2846_v28  ;;  %v2780_v38 = vmul.f32 %v3820_v4, %v4497_v57  ;;  %v2639_v6 = vadd.f32 %v2623_v17, %v2586_v12  ;;  %v2831_v60 = vmul.f32 %v3830_v24, %v4503_v29  ;;  %v4552_v23 = vld [vmem:[#allocation2 + $0xa9] sm:$0xff]  ;;  %v4554_v17 = vld [vmem:[#allocation2 + $0xb1] sm:$0xff] }
 0x169   : > { %v2920_v52 = vadd.f32 %v4364_v35, %v2897_v30  ;;  %v2832_v0 = vmul.f32 %v3830_v24, %v4505_v19  ;;  %v2690_v32 = vadd.f32 %v2674_v44, %v2638_v45  ;;  %v2883_v34 = vmul.f32 %v4295_v42, %v4512_v26  ;;  %v4562_v30 = vld [vmem:[#allocation2 + $0xaa] sm:$0xff]  ;;  %v4567_v45 = vld [vmem:[#allocation2 + $0xb2] sm:$0xff] }
 0x16a   : > { %v2921_v53 = vadd.f32 %v4364_v35, %v2898_v41  ;;  %v2884_v5 = vmul.f32 %v4295_v42, %v4514_v8  ;;  %v2691_v14 = vadd.f32 %v2675_v7, %v2639_v6  ;;  %v2467_v27 = vmul.f32 %v4444_v25, %v3769_v36 }
 0x16b   : > { %v2936_v20 = vmax.f32 %v2920_v52, 0.0  ;;  %v2468_v13 = vmul.f32 %v4448_v15, %v3769_v36  ;;  %v2742_v16 = vadd.f32 %v2726_v61, %v2690_v32  ;;  %v2519_v18 = vmul.f32 %v4450_v37, %v3788_v48 }
 0x16c   : > { %v2937_v9 = vmax.f32 %v2921_v53, 0.0  ;;  %v2520_v54 = vmul.f32 %v4456_v51, %v3788_v48  ;;  %v2743_v2 = vadd.f32 %v2727_v43, %v2691_v14  ;;  %v2571_v33 = vmul.f32 %v4458_v1, %v3791_v49 }
 0x16d   : > { %v2952_v21 = vmin.f32 %v2936_v20, 6.0  ;;  %v2572_v22 = vmul.f32 %v4466_v10, %v3791_v49  ;;  %v2795_v55 = vadd.f32 %v2779_v47, %v2742_v16  ;;  %v2535_v62 = vadd.f32 %v2519_v18, %v2467_v27 }
 0x16e   : > { %v2953_v25 = vmin.f32 %v2937_v9, 6.0  ;;  %v2536_v15 = vadd.f32 %v2520_v54, %v2468_v13  ;;  %v2796_v3 = vadd.f32 %v2780_v38, %v2743_v2  ;;  %v2624_v46 = vmul.f32 %v4495_v11, %v3794_v50 }
 0x16f   : > { %v2625_v37 = vmul.f32 %v4497_v57, %v3794_v50  ;;  %v2676_v51 = vmul.f32 %v4503_v29, %v3810_v58  ;;  %v2847_v56 = vadd.f32 %v2831_v60, %v2795_v55  ;;  %v2587_v40 = vadd.f32 %v2571_v33, %v2535_v62 }
 0x170   : > { %v2965_v1 = vpack.c.bf16 %v2953_v25, %v2952_v21  ;;  %v2588_v10 = vadd.f32 %v2572_v22, %v2536_v15  ;;  %v2848_v28 = vadd.f32 %v2832_v0, %v2796_v3  ;;  %v2677_v63 = vmul.f32 %v4505_v19, %v3810_v58 }
 0x171   : > { %v2728_v44 = vmul.f32 %v4512_v26, %v3813_v59  ;;  %v2729_v7 = vmul.f32 %v4514_v8, %v3813_v59  ;;  %v2899_v12 = vadd.f32 %v2883_v34, %v2847_v56  ;;  %v2640_v61 = vadd.f32 %v2624_v46, %v2587_v40  ;;  %v2763_v46 = vld [vmem:[#allocation2 + $0xc0] sm:$0xff] }
 0x172   : > { %3387 = vmatmul.mubr.msk.bf16.gmra.mxu1 %vm2403_vm14, %v2965_v1  ;;  %v2641_v43 = vadd.f32 %v2625_v37, %v2588_v10  ;;  %v2781_v41 = vmul.f32 %v3820_v4, %v4548_v31  ;;  %v2900_v47 = vadd.f32 %v2884_v5, %v2848_v28  ;;  %v2782_v38 = vmul.f32 %v3820_v4, %v4550_v39  ;;  %v2815_v28 = vld [vmem:[#allocation2 + $0xc1] sm:$0xff] }
 0x173   : > { %v2833_v52 = vmul.f32 %v3830_v24, %v4552_v23  ;;  %v2834_v6 = vmul.f32 %v3830_v24, %v4554_v17  ;;  %v2922_v60 = vadd.f32 %v4364_v35, %v2899_v12  ;;  %v2692_v0 = vadd.f32 %v2676_v51, %v2640_v61  ;;  %v2764_v51 = vld [vmem:[#allocation2 + $0xc8] sm:$0xff] }
 0x174   : > { %v2693_v53 = vadd.f32 %v2677_v63, %v2641_v43  ;;  %v2885_v32 = vmul.f32 %v4295_v42, %v4562_v30  ;;  %v2923_v34 = vadd.f32 %v4364_v35, %v2900_v47  ;;  %v2886_v5 = vmul.f32 %v4295_v42, %v4567_v45  ;;  %v2816_v63 = vld [vmem:[#allocation2 + $0xc9] sm:$0xff] }
 0x175   : > { %v2469_v20 = vmul.f32 %v4495_v11, %v3769_v36  ;;  %v2470_v14 = vmul.f32 %v4497_v57, %v3769_v36  ;;  %v2938_v27 = vmax.f32 %v2922_v60, 0.0  ;;  %v2744_v13 = vadd.f32 %v2728_v44, %v2692_v0  ;;  %v2867_v44 = vld [vmem:[#allocation2 + $0xc2] sm:$0xff] }
 0x176   : > { %v2745_v9 = vadd.f32 %v2729_v7, %v2693_v53  ;;  %v2521_v16 = vmul.f32 %v4503_v29, %v3788_v48  ;;  %v2939_v18 = vmax.f32 %v2923_v34, 0.0  ;;  %v2522_v54 = vmul.f32 %v4505_v19, %v3788_v48 }
 0x177   : > { %v2573_v21 = vmul.f32 %v4512_v26, %v3791_v49  ;;  %v2574_v2 = vmul.f32 %v4514_v8, %v3791_v49  ;;  %v2954_v11 = vmin.f32 %v2938_v27, 6.0  ;;  %v2797_v33 = vadd.f32 %v2781_v41, %v2744_v13  ;;  %v2868_v27 = vld [vmem:[#allocation2 + $0xca] sm:$0xff] }
 0x178   : > { %v2798_v22 = vadd.f32 %v2782_v38, %v2745_v9  ;;  %v2537_v57 = vadd.f32 %v2521_v16, %v2469_v20  ;;  %v2955_v25 = vmin.f32 %v2939_v18, 6.0  ;;  %v2538_v55 = vadd.f32 %v2522_v54, %v2470_v14 }
 0x179   : > { %v2626_v62 = vmul.f32 %v4548_v31, %v3794_v50  ;;  %v2627_v29 = vmul.f32 %v4550_v39, %v3794_v50  ;;  %v2849_v15 = vadd.f32 %v2833_v52, %v2797_v33  ;;  %v2678_v26 = vmul.f32 %v4552_v23, %v3810_v58 }
 0x17a   : > { %v2850_v19 = vadd.f32 %v2834_v6, %v2798_v22  ;;  %v2589_v3 = vadd.f32 %v2573_v21, %v2537_v57  ;;  %v2966_v8 = vpack.c.bf16 %v2955_v25, %v2954_v11  ;;  %v2590_v37 = vadd.f32 %v2574_v2, %v2538_v55 }
 0x17b   : > { %v2901_v1 = vadd.f32 %v2885_v32, %v2849_v15  ;;  %v2679_v10 = vmul.f32 %v4554_v17, %v3810_v58  ;;  %v2730_v12 = vmul.f32 %v4562_v30, %v3813_v59  ;;  %v2731_v61 = vmul.f32 %v4567_v45, %v3813_v59 }
 0x17c   : > { %v2902_v56 = vadd.f32 %v2886_v5, %v2850_v19  ;;  %v2642_v40 = vadd.f32 %v2626_v62, %v2589_v3  ;;  %3390 = vmatprep.mubr.msk.bf16.mxu1 %vm2403_vm14, %v2966_v8  ;;  %v2643_v7 = vadd.f32 %v2627_v29, %v2590_v37  ;;  %v2783_v43 = vmul.f32 %v3820_v4, %v2763_v46 }
 0x17d   : > { %v2924_v41 = vadd.f32 %v4364_v35, %v2901_v1  ;;  %v2784_v52 = vmul.f32 %v3820_v4, %v2764_v51  ;;  %v2835_v60 = vmul.f32 %v3830_v24, %v2815_v28  ;;  %v2836_v0 = vmul.f32 %v3830_v24, %v2816_v63  ;;  %v2817_v1 = vld [vmem:[#allocation2 + $0xd9] sm:$0xff] }
 0x17e   : > { %v2925_v47 = vadd.f32 %v4364_v35, %v2902_v56  ;;  %v2694_v38 = vadd.f32 %v2678_v26, %v2642_v40  ;;  %v2695_v6 = vadd.f32 %v2679_v10, %v2643_v7  ;;  %v2887_v53 = vmul.f32 %v4295_v42, %v2867_v44  ;;  %v2818_v56 = vld [vmem:[#allocation2 + $0xe1] sm:$0xff] }
 0x17f   : > { %v2940_v32 = vmax.f32 %v2924_v41, 0.0  ;;  %v2472_v20 = vmul.f32 %v4550_v39, %v3769_v36  ;;  %v2471_v13 = vmul.f32 %v4548_v31, %v3769_v36  ;;  %v2523_v9 = vmul.f32 %v4552_v23, %v3788_v48 }
 0x180   : > { %v2941_v34 = vmax.f32 %v2925_v47, 0.0  ;;  %v2746_v5 = vadd.f32 %v2730_v12, %v2694_v38  ;;  %v2747_v14 = vadd.f32 %v2731_v61, %v2695_v6  ;;  %v2524_v16 = vmul.f32 %v4554_v17, %v3788_v48  ;;  %v2869_v12 = vld [vmem:[#allocation2 + $0xda] sm:$0xff] }
 0x181   : > { %v2956_v18 = vmin.f32 %v2940_v32, 6.0  ;;  %v2575_v2 = vmul.f32 %v4562_v30, %v3791_v49  ;;  %v2539_v33 = vadd.f32 %v2523_v9, %v2471_v13  ;;  %v2576_v22 = vmul.f32 %v4567_v45, %v3791_v49  ;;  %v2765_v45 = vld [vmem:[#allocation2 + $0xd8] sm:$0xff] }
 0x182   : > { %v2957_v54 = vmin.f32 %v2941_v34, 6.0  ;;  %v2799_v21 = vadd.f32 %v2783_v43, %v2746_v5  ;;  %v2800_v11 = vadd.f32 %v2784_v52, %v2747_v14  ;;  %v2540_v39 = vadd.f32 %v2524_v16, %v2472_v20  ;;  %v2870_v43 = vld [vmem:[#allocation2 + $0xe2] sm:$0xff]  ;;  %v3313_v9 = vld [vmem:[%s3595_s15 + $0x31] sm:$0xff] }
 0x183   : > { %v2888_v31 = vmul.f32 %v4295_v42, %v2868_v27  ;;  %v2628_v23 = vmul.f32 %v2763_v46, %v3794_v50  ;;  %v2591_v48 = vadd.f32 %v2575_v2, %v2539_v33  ;;  %v2629_v55 = vmul.f32 %v2764_v51, %v3794_v50  ;;  %v2766_v46 = vld [vmem:[#allocation2 + $0xe0] sm:$0xff] }
 0x184   : > { %v2967_v57 = vpack.c.bf16 %v2957_v54, %v2956_v18  ;;  %v2851_v36 = vadd.f32 %v2835_v60, %v2799_v21  ;;  %v2852_v25 = vadd.f32 %v2836_v0, %v2800_v11  ;;  %v2592_v17 = vadd.f32 %v2576_v22, %v2540_v39  ;;  %v3311_v54 = vld [vmem:[%s3595_s15 + $0x19] sm:$0xff] }
 0x185   : > { %v2680_v62 = vmul.f32 %v2815_v28, %v3810_v58  ;;  %v2644_v15 = vadd.f32 %v2628_v23, %v2591_v48  ;;  %v2681_v49 = vmul.f32 %v2816_v63, %v3810_v58  ;;  %v2732_v26 = vmul.f32 %v2867_v44, %v3813_v59  ;;  %v3314_v33 = vld [vmem:[%s3595_s15 + $0x39] sm:$0xff] }
 0x186   : > { %3391 = vmatmul.mubr.msk.bf16.gmra.mxu1 %vm2403_vm14, %v2967_v57  ;;  %v2903_v30 = vadd.f32 %v2887_v53, %v2851_v36  ;;  %v2904_v29 = vadd.f32 %v2888_v31, %v2852_v25  ;;  %v2645_v19 = vadd.f32 %v2629_v55, %v2592_v17  ;;  %v2733_v51 = vmul.f32 %v2868_v27, %v3813_v59  ;;  %v3312_v36 = vld [vmem:[%s3595_s15 + $0x21] sm:$0xff] }
 0x187   : > { %v2696_v37 = vadd.f32 %v2680_v62, %v2644_v15  ;;  %v2785_v10 = vmul.f32 %v3820_v4, %v2765_v45  ;;  %v2786_v63 = vmul.f32 %v3820_v4, %v2766_v46  ;;  %v2837_v44 = vmul.f32 %v3830_v24, %v2817_v1  ;;  %v3317_v17 = vld [vmem:[%s3595_s15 + $0x61] sm:$0xff]  ;;  %v3315_v62 = vld [vmem:[%s3595_s15 + $0x49] sm:$0xff]  ;;  %v3316_v46 = vld [vmem:[%s3595_s15 + $0x51] sm:$0xff] }
 0x188   : > { %v2926_v3 = vadd.f32 %v4364_v35, %v2903_v30  ;;  %v2927_v8 = vadd.f32 %v4364_v35, %v2904_v29  ;;  %v2697_v50 = vadd.f32 %v2681_v49, %v2645_v19  ;;  %v2838_v61 = vmul.f32 %v3830_v24, %v2818_v56  ;;  %v3318_v49 = vld [vmem:[%s3595_s15 + $0x69] sm:$0xff]  ;;  %v3321_v1 = vld [vmem:[%s3595_s15 + $0x91] sm:$0xff] }
 0x189   : > { %v2748_v7 = vadd.f32 %v2732_v26, %v2696_v37  ;;  %v2889_v52 = vmul.f32 %v4295_v42, %v2869_v12  ;;  %v2890_v4 = vmul.f32 %v4295_v42, %v2870_v43  ;;  %v4651_v42 = vld [vmem:[%s4743_s6] ss:$0 sm:$0xff]  ;;  %v3320_v43 = vld [vmem:[%s3595_s15 + $0x81] sm:$0xff] }
 0x18a   : > { %v2942_v40 = vmax.f32 %v2926_v3, 0.0  ;;  %v2943_v28 = vmax.f32 %v2927_v8, 0.0  ;;  %v2749_v58 = vadd.f32 %v2733_v51, %v2697_v50 }
 0x18b   : > { %v2801_v38 = vadd.f32 %v2785_v10, %v2748_v7  ;;  %v3319_v10 = vld [vmem:[%s3595_s15 + $0x79] sm:$0xff] }
 0x18c   : > { %v2958_v41 = vmin.f32 %v2942_v40, 6.0  ;;  %v2959_v47 = vmin.f32 %v2943_v28, 6.0  ;;  %v2802_v59 = vadd.f32 %v2786_v63, %v2749_v58  ;;  %v3322_v63 = vld [vmem:[%s3595_s15 + $0x99] sm:$0xff] }
 0x18d   : > { %v2853_v60 = vadd.f32 %v2837_v44, %v2801_v38 }
 0x18e   : > { %v2968_v6 = vpack.c.bf16 %v2959_v47, %v2958_v41  ;;  %v2854_v0 = vadd.f32 %v2838_v61, %v2802_v59 }
 0x18f   : > { %v2905_v53 = vadd.f32 %v2889_v52, %v2853_v60  ;;  %v3325_v52 = vld [vmem:[%s3595_s15 + $0xc1] sm:$0xff] }
 0x190   : > { %3394 = vmatprep.mubr.msk.bf16.mxu1 %vm2403_vm14, %v2968_v6  ;;  %v2906_v32 = vadd.f32 %v2890_v4, %v2854_v0  ;;  %v3323_v0 = vld [vmem:[%s3595_s15 + $0xa9] sm:$0xff] }
 0x191   : > { %v2928_v24 = vadd.f32 %v4364_v35, %v2905_v53 }
 0x192   : > { %v2929_v34 = vadd.f32 %v4364_v35, %v2906_v32 }
 0x193   : > { %v2944_v5 = vmax.f32 %v2928_v24, 0.0  ;;  %v3326_v24 = vld [vmem:[%s3595_s15 + $0xc9] sm:$0xff] }
 0x194   : > { %v2945_v20 = vmax.f32 %v2929_v34, 0.0 }
 0x195   : > { %v2960_v14 = vmin.f32 %v2944_v5, 6.0 }
 0x196   : > { %v2961_v27 = vmin.f32 %v2945_v20, 6.0 }
 0x198   : > { %v2969_v13 = vpack.c.bf16 %v2961_v27, %v2960_v14  ;;  %v3324_v14 = vld [vmem:[%s3595_s15 + $0xb1] sm:$0xff] }
 0x19a   : > { %3395 = vmatmul.mubr.msk.bf16.gmra.mxu1 %vm2403_vm14, %v2969_v13 }
 0x21d   : > { %v3384_v35 = vpop.f32.mrf.mxu1 }
 0x21e   : > { %v3060_v16 = vadd.f32 %v3384_v35, %v4651_v42 }
 0x21f   : > { %v3051_v18 = vpop.f32.mrf.mxu1 }
 0x220   : > { %v3135_v21 = vadd.f32 %v3313_v9, %v3060_v16  ;;  %v3052_v2 = vadd.f32 %v4651_v42, %v3051_v18 }
 0x221   : > { %v3385_v11 = vpop.f32.mrf.mxu1 }
 0x222   : > { %3151 = vst.msk [vmem:[%s4658_s22 + $0x10] sm:$0xff] %vm1203_vm1, %v3135_v21  ;;  %v3133_v39 = vadd.f32 %v3311_v54, %v3052_v2  ;;  %v3063_v22 = vadd.f32 %v3385_v11, %v4651_v42 }
 0x223   : > { %v3054_v57 = vpop.f32.mrf.mxu1 }
 0x224   : > { %3149 = vst.msk [vmem:[%s4658_s22] sm:$0xff] %vm1203_vm1, %v3133_v39  ;;  %v3136_v31 = vadd.f32 %v3314_v33, %v3063_v22  ;;  %v3055_v23 = vadd.f32 %v4651_v42, %v3054_v57 }
 0x226   : > { %3152 = vst.msk [vmem:[%s4658_s22 + $0x18] sm:$0xff] %vm1203_vm1, %v3136_v31  ;;  %v3134_v25 = vadd.f32 %v3312_v36, %v3055_v23 }
 0x228   : > { %3150 = vst.msk [vmem:[%s4658_s22 + $0x8] sm:$0xff] %vm1203_vm1, %v3134_v25 }
 0x232   : > { %v3388_v48 = vpop.f32.mrf.mxu1 }
 0x233   : > { %v3076_v55 = vadd.f32 %v3388_v48, %v4651_v42 }
 0x234   : > { %v3067_v30 = vpop.f32.mrf.mxu1 }
 0x235   : > { %v3139_v29 = vadd.f32 %v3317_v17, %v3076_v55  ;;  %v3068_v15 = vadd.f32 %v4651_v42, %v3067_v30 }
 0x236   : > { %v3389_v19 = vpop.f32.mrf.mxu1 }
 0x237   : > { %3155 = vst.msk [vmem:[%s4658_s22 + $0x30] sm:$0xff] %vm1203_vm1, %v3139_v29  ;;  %v3137_v45 = vadd.f32 %v3315_v62, %v3068_v15  ;;  %v3079_v3 = vadd.f32 %v3389_v19, %v4651_v42 }
 0x238   : > { %v3070_v26 = vpop.f32.mrf.mxu1 }
 0x239   : > { %3153 = vst.msk [vmem:[%s4658_s22 + $0x20] sm:$0xff] %vm1203_vm1, %v3137_v45  ;;  %v3140_v8 = vadd.f32 %v3318_v49, %v3079_v3  ;;  %v3071_v37 = vadd.f32 %v4651_v42, %v3070_v26 }
 0x23b   : > { %3156 = vst.msk [vmem:[%s4658_s22 + $0x38] sm:$0xff] %vm1203_vm1, %v3140_v8  ;;  %v3138_v50 = vadd.f32 %v3316_v46, %v3071_v37 }
 0x23d   : > { %3154 = vst.msk [vmem:[%s4658_s22 + $0x28] sm:$0xff] %vm1203_vm1, %v3138_v50 }
 0x246   : > { %v3392_v51 = vpop.f32.mrf.mxu1 }
 0x247   : > { %v3092_v56 = vadd.f32 %v3392_v51, %v4651_v42 }
 0x248   : > { %v3083_v40 = vpop.f32.mrf.mxu1 }
 0x249   : > { %v3143_v28 = vadd.f32 %v3321_v1, %v3092_v56  ;;  %v3084_v7 = vadd.f32 %v4651_v42, %v3083_v40 }
 0x24a   : > { %v3393_v58 = vpop.f32.mrf.mxu1 }
 0x24b   : > { %3159 = vst.msk [vmem:[%s4658_s22 + $0x50] sm:$0xff] %vm1203_vm1, %v3143_v28  ;;  %v3141_v12 = vadd.f32 %v3319_v10, %v3084_v7  ;;  %v3095_v44 = vadd.f32 %v3393_v58, %v4651_v42 }
 0x24c   : > { %v3086_v61 = vpop.f32.mrf.mxu1 }
 0x24d   : > { %3157 = vst.msk [vmem:[%s4658_s22 + $0x40] sm:$0xff] %vm1203_vm1, %v3141_v12  ;;  %v3144_v41 = vadd.f32 %v3322_v63, %v3095_v44  ;;  %v3087_v47 = vadd.f32 %v4651_v42, %v3086_v61 }
 0x24f   : > { %3160 = vst.msk [vmem:[%s4658_s22 + $0x58] sm:$0xff] %vm1203_vm1, %v3144_v41  ;;  %v3142_v38 = vadd.f32 %v3320_v43, %v3087_v47 }
 0x251   : > { %3158 = vst.msk [vmem:[%s4658_s22 + $0x48] sm:$0xff] %vm1203_vm1, %v3142_v38 }
 0x25a   : > { %v3396_v59 = vpop.f32.mrf.mxu1 }
 0x25b   : > { %v3108_v6 = vadd.f32 %v3396_v59, %v4651_v42 }
 0x25c   : > { %v3099_v60 = vpop.f32.mrf.mxu1 }
 0x25d   : > { %v3147_v4 = vadd.f32 %v3325_v52, %v3108_v6  ;;  %v3100_v53 = vadd.f32 %v4651_v42, %v3099_v60 }
 0x25e   : > { %v3397_v32 = vpop.f32.mrf.mxu1 }
 0x25f   : > { %3163 = vst.msk [vmem:[%s4658_s22 + $0x70] sm:$0xff] %vm1203_vm1, %v3147_v4  ;;  %v3145_v34 = vadd.f32 %v3323_v0, %v3100_v53  ;;  %v3111_v5 = vadd.f32 %v3397_v32, %v4651_v42 }
 0x260   : > { %v3102_v20 = vpop.f32.mrf.mxu1 }
 0x261   : > { %3161 = vst.msk [vmem:[%s4658_s22 + $0x60] sm:$0xff] %vm1203_vm1, %v3145_v34  ;;  %v3148_v27 = vadd.f32 %v3326_v24, %v3111_v5  ;;  %v3103_v13 = vadd.f32 %v4651_v42, %v3102_v20 }
 0x263   : > { %3164 = vst.msk [vmem:[%s4658_s22 + $0x78] sm:$0xff] %vm1203_vm1, %v3148_v27  ;;  %v3146_v35 = vadd.f32 %v3324_v14, %v3103_v13 }
 0x265   : > { %3162 = vst.msk [vmem:[%s4658_s22 + $0x68] sm:$0xff] %vm1203_vm1, %v3146_v35 }
 0x266 PF: > { %s17_s28 = sadd.s32 1, %s3505_s28   ;;  %s4799_s24 = smov %s3497_s26 }
 0x267   : > { %p14_p7 = scmp.ge.s32.totalorder %s17_s28, 6   ;;  %s4800_s25 = smov %s3501_s27 }
 0x268   : > { %s4801_s26 = smov %s4804_s29  ;;  %s4802_s27 = smov %s4808_s30 }
 0x269   :  { %16 = sbr.rel (!%p14_p7) target bundleno = 3 (0x3), region = 82 }

</bundles_post_ra>
